<compile_context>
chip_gen: v7x
topology: tpu7x:2x2x1
jax: 0.10.0
libtpu: 0.0.40
codegen_flags: <defaults>
</compile_context>

<pallas_src>
import functools

import jax
import jax.numpy as jnp
from jax import lax
from jax.experimental import pallas as pl
from jax.experimental.pallas import tpu as pltpu

_LANE = 128
_SUBLANE = 8


def _round_up(n, m):
    return ((n + m - 1) // m) * m


def _pad_to(a, shape):
    pads = [(0, t - s) for s, t in zip(a.shape, shape)]
    if any(p for _, p in pads):
        a = jnp.pad(a, pads)
    return a


# ---------------------------------------------------------------------------
# Kernel
# ---------------------------------------------------------------------------
def _gaussian_mlp_kernel(x_ref,
                         w1_ref, b1_ref,
                         w2_ref, b2_ref,
                         w3_ref, b3_ref,
                         w4_ref, b4_ref,
                         o_ref, *, compute_dtype, precision):
    def dense(h, w_ref, b_ref):
        acc = jnp.dot(h, w_ref[...], preferred_element_type=jnp.float32,
                      precision=precision)
        return acc + b_ref[...]          # bias kept in f32, added to f32 acc

    h = x_ref[...]                                            # compute_dtype
    h = jnp.maximum(dense(h, w1_ref, b1_ref), 0.0).astype(compute_dtype)
    h = jnp.maximum(dense(h, w2_ref, b2_ref), 0.0).astype(compute_dtype)
    h = jnp.maximum(dense(h, w3_ref, b3_ref), 0.0).astype(compute_dtype)
    o_ref[...] = dense(h, w4_ref, b4_ref).astype(o_ref.dtype)


# ---------------------------------------------------------------------------
# One-time probe: single-buffered (Buffered(1)) replicated inputs supported?
# ---------------------------------------------------------------------------
_SINGLE_BUFFER_OK = None


def _single_buffer_supported():
    global _SINGLE_BUFFER_OK
    if _SINGLE_BUFFER_OK is not None:
        return _SINGLE_BUFFER_OK
    try:
        def probe_kernel(a_ref, w_ref, o_ref):
            o_ref[...] = a_ref[...] + w_ref[...]

        probe = pl.pallas_call(
            probe_kernel,
            out_shape=jax.ShapeDtypeStruct((16, _LANE), jnp.float32),
            grid_spec=pltpu.PrefetchScalarGridSpec(
                num_scalar_prefetch=0,
                grid=(2,),
                in_specs=[
                    pl.BlockSpec((8, _LANE), lambda i: (i, 0)),
                    pl.BlockSpec((8, _LANE), lambda i: (0, 0),
                                 pipeline_mode=pl.Buffered(1)),
                ],
                out_specs=pl.BlockSpec((8, _LANE), lambda i: (i, 0)),
            ),
        )
        res = jax.block_until_ready(
            probe(jnp.zeros((16, _LANE), jnp.float32),
                  jnp.ones((8, _LANE), jnp.float32)))
        _SINGLE_BUFFER_OK = bool(jnp.allclose(res, 1.0))
    except Exception:
        _SINGLE_BUFFER_OK = False
    return _SINGLE_BUFFER_OK


def _rep_spec(shape, single_buffered):
    # Constant index_map -> DMA'd once; Buffered(1) drops the wasted 2nd buffer.
    if single_buffered:
        return pl.BlockSpec(shape, lambda i: (0, 0), pipeline_mode=pl.Buffered(1))
    return pl.BlockSpec(shape, lambda i: (0, 0))


# ---------------------------------------------------------------------------
# Builder (cached per static config) + wrapper
# ---------------------------------------------------------------------------
@functools.lru_cache(maxsize=None)
def _build_forward(batch, input_dim, hidden, out_dim2, in_pad, hidden_pad,
                   out_store, tb, compute_dtype, precision, single_buffered,
                   vmem_limit):
    compute_dtype = jnp.dtype(compute_dtype)
    csize = compute_dtype.itemsize
    kernel = functools.partial(_gaussian_mlp_kernel,
                               compute_dtype=compute_dtype,
                               precision=precision)

    grid = (pl.cdiv(batch, tb),)
    in_specs = [
        pl.BlockSpec((tb, in_pad), lambda i: (i, 0)),
        _rep_spec((in_pad, hidden_pad), single_buffered),
        _rep_spec((1, hidden_pad), single_buffered),
        _rep_spec((hidden_pad, hidden_pad), single_buffered),
        _rep_spec((1, hidden_pad), single_buffered),
        _rep_spec((hidden_pad, hidden_pad), single_buffered),
        _rep_spec((1, hidden_pad), single_buffered),
        _rep_spec((hidden_pad, out_store), single_buffered),
        _rep_spec((1, out_store), single_buffered),
    ]
    out_spec = pl.BlockSpec((tb, out_store), lambda i: (i, 0))

    weight_elems = (in_pad * hidden_pad + 2 * hidden_pad * hidden_pad
                    + hidden_pad * out_store)
    flops = 2 * batch * weight_elems
    bytes_accessed = (batch * in_pad * csize + weight_elems * csize
                      + (3 * hidden_pad + out_store) * 4
                      + batch * out_store * 4)
    cost = pl.CostEstimate(flops=flops, transcendentals=0,
                           bytes_accessed=bytes_accessed)

    call = pl.pallas_call(
        kernel,
        out_shape=jax.ShapeDtypeStruct((batch, out_store), jnp.float32),
        grid_spec=pltpu.PrefetchScalarGridSpec(
            num_scalar_prefetch=0,
            grid=grid,
            in_specs=in_specs,
            out_specs=out_spec,
        ),
        compiler_params=pltpu.CompilerParams(
            dimension_semantics=("parallel",),
            vmem_limit_bytes=vmem_limit),
        cost_estimate=cost,
    )

    def fwd(x, w1, b1, w2, b2, w3, b3, w4, b4):
        # input_states.float(); cast to the MXU compute dtype and one-time lane
        # padding are fused under this jit.  For serving, pre-cast the params
        # once (cast_params) so the astype here is a no-op.
        x = _pad_to(x.astype(jnp.float32).astype(compute_dtype), (batch, in_pad))
        w1p = _pad_to(w1.astype(compute_dtype), (in_pad, hidden_pad))
        w2p = _pad_to(w2.astype(compute_dtype), (hidden_pad, hidden_pad))
        w3p = _pad_to(w3.astype(compute_dtype), (hidden_pad, hidden_pad))
        w4p = _pad_to(w4.astype(compute_dtype), (hidden_pad, out_store))
        b1p = _pad_to(b1.astype(jnp.float32), (1, hidden_pad))
        b2p = _pad_to(b2.astype(jnp.float32), (1, hidden_pad))
        b3p = _pad_to(b3.astype(jnp.float32), (1, hidden_pad))
        b4p = _pad_to(b4.astype(jnp.float32), (1, out_store))
        out = call(x, w1p, b1p, w2p, b2p, w3p, b3p, w4p, b4p)
        if out_store != out_dim2:
            out = out[:, :out_dim2]
        return out

    return jax.jit(fwd)


def gaussian_mlp_forward(x, params, *, block_batch=256,
                         compute_dtype=jnp.bfloat16, precision=None,
                         lane_dense_out=None):
    """Pallas implementation of GaussianMLP.forward.

    x:             (batch, input_dim), any float dtype (cast to f32 like .float()).
    params:        dict, w1..w4 stored as (in, out) (= PyTorch weight.T),
                   b1..b4 as (1, out).
    compute_dtype: MXU input dtype.  bfloat16 (default) -> ~3x matmul throughput
                   & half the weight footprint; float32 -> PyTorch-parity
                   numerics (dots then run with precision=HIGHEST).
    returns:       (batch, 2 * output_dim) float32.
    """
    w1, b1 = params["w1"], params["b1"]
    w2, b2 = params["w2"], params["b2"]
    w3, b3 = params["w3"], params["b3"]
    w4, b4 = params["w4"], params["b4"]

    batch, input_dim = x.shape
    hidden = w1.shape[1]
    out_dim2 = w4.shape[1]

    compute_dtype = jnp.dtype(compute_dtype)
    if precision is None and compute_dtype == jnp.float32:
        # PyTorch f32 Linear parity: avoid the default reduced-precision MXU pass.
        precision = lax.Precision.HIGHEST

    # Lane-dense feature dims (zero-padded weights are exact through bias+ReLU).
    in_pad = _round_up(input_dim, _LANE)
    hidden_pad = _round_up(hidden, _LANE)

    # Output columns: lane-pad only when clearly MXU-bound; otherwise write the
    # exact columns (legal: block dim == full array dim) -> less HBM writeback.
    if lane_dense_out is None:
        lane_dense_out = hidden_pad >= 512
    if out_dim2 % _LANE == 0:
        out_store = out_dim2
    else:
        out_store = _round_up(out_dim2, _LANE) if lane_dense_out else out_dim2

    single_buffered = _single_buffer_supported()

    # Batch tile: big (amortize ~0.35us/step), but >=2 grid steps once
    # batch >= 32 so the "parallel" axis can shard across v7x's 2 TensorCores.
    tb = min(int(block_batch), batch)
    if batch >= 32:
        tb = min(tb, _round_up(pl.cdiv(batch, 2), _SUBLANE))
    if tb < batch:
        tb = max(_SUBLANE, (tb // _SUBLANE) * _SUBLANE)

    # Generation-aware VMEM budget; shrink tb until the estimate fits.
    try:
        vmem_cap = int(pltpu.get_tpu_info().vmem_capacity_bytes)
    except Exception:
        vmem_cap = 64 << 20                  # v7x floor; safe on every generation
    budget = min(vmem_cap - (8 << 20), 100 << 20)

    csize = compute_dtype.itemsize
    wbufs = 1 if single_buffered else 2
    weight_bytes = (in_pad * hidden_pad + 2 * hidden_pad * hidden_pad
                    + hidden_pad * out_store) * csize
    bias_bytes = (3 * hidden_pad + out_store) * 4

    def vmem_needed(tb_):
        io = 2 * (tb_ * in_pad * csize + tb_ * out_store * 4)   # double-buffered
        act = 3 * tb_ * hidden_pad * 4                          # f32 intermediates
        return wbufs * (weight_bytes + bias_bytes) + io + act

    while vmem_needed(tb) > budget and tb > _SUBLANE:
        tb = max(_SUBLANE, (tb // 2 // _SUBLANE) * _SUBLANE)
    # TODO(synk): if the single-buffered weights alone exceed the budget
    # (hidden ~> 2000 f32 / ~2800 bf16 on v7x), add a hidden-tiled accumulator
    # path (grid over K/N blocks with pl.when init) instead of spilling.

    vmem_limit = int(min(max(vmem_needed(tb) + (8 << 20), 32 << 20),
                         max(budget, 32 << 20)))

    fn = _build_forward(batch, input_dim, hidden, out_dim2, in_pad, hidden_pad,
                        out_store, tb, compute_dtype, precision,
                        single_buffered, vmem_limit)
    return fn(x, w1, b1, w2, b2, w3, b3, w4, b4)


# ---------------------------------------------------------------------------
# Params / reference
# ---------------------------------------------------------------------------
def init_gaussian_mlp_params(key, input_dim, output_dim, hidden_size):
    """Matches GaussianMLP.__init__ shapes: Xavier-normal weights (stored as
    (in, out) = PyTorch weight.T), PyTorch-default uniform biases."""
    def xavier_normal(k, fan_in, fan_out):
        std = (2.0 / (fan_in + fan_out)) ** 0.5
        return (std * jax.random.normal(k, (fan_in, fan_out))).astype(jnp.float32)

    def bias_init(k, fan_in, fan_out):
        bound = 1.0 / (fan_in ** 0.5)
        return jax.random.uniform(k, (1, fan_out), minval=-bound, maxval=bound,
                                  dtype=jnp.float32)

    ks = jax.random.split(key, 8)
    h = int(hidden_size)
    return {
        "w1": xavier_normal(ks[0], input_dim, h),
        "b1": bias_init(ks[1], input_dim, h),
        "w2": xavier_normal(ks[2], h, h),
        "b2": bias_init(ks[3], h, h),
        "w3": xavier_normal(ks[4], h, h),
        "b3": bias_init(ks[5], h, h),
        "w4": xavier_normal(ks[6], h, 2 * output_dim),
        "b4": bias_init(ks[7], h, 2 * output_dim),
    }


def cast_params(params, dtype=jnp.bfloat16):
    """Pre-cast weight matrices (not biases) so the in-jit cast is a no-op."""
    out = dict(params)
    for k in ("w1", "w2", "w3", "w4"):
        out[k] = params[k].astype(dtype)
    return out


def _reference_forward(x, params):
    """Pure-JAX f32 reference of GaussianMLP.forward (HIGHEST precision)."""
    hp = lax.Precision.HIGHEST
    h = x.astype(jnp.float32)
    h = jnp.maximum(jnp.dot(h, params["w1"], precision=hp) + params["b1"], 0.0)
    h = jnp.maximum(jnp.dot(h, params["w2"], precision=hp) + params["b2"], 0.0)
    h = jnp.maximum(jnp.dot(h, params["w3"], precision=hp) + params["b3"], 0.0)
    return jnp.dot(h, params["w4"], precision=hp) + params["b4"]


if __name__ == "__main__":
    # Small shapes consistent with the module's forward.
    batch, input_dim, output_dim, hidden_size = 24, 16, 4, 32

    key = jax.random.PRNGKey(0)
    pkey, xkey = jax.random.split(key)
    params = init_gaussian_mlp_params(pkey, input_dim, output_dim, hidden_size)
    x = jax.random.normal(xkey, (batch, input_dim), dtype=jnp.float32)

    ref = _reference_forward(x, params)

    # 1) f32 / HIGHEST-precision path: PyTorch-parity numerics.
    out_f32 = jax.block_until_ready(
        gaussian_mlp_forward(x, params, compute_dtype=jnp.float32))
    assert out_f32.shape == (batch, 2 * output_dim)
    assert jnp.allclose(out_f32, ref, atol=1e-4, rtol=1e-4), "f32 path mismatch"

    # 2) default bf16 MXU path (weights pre-cast once; f32 accumulation).
    params_bf16 = cast_params(params, jnp.bfloat16)
    out_bf16 = jax.block_until_ready(gaussian_mlp_forward(x, params_bf16))
    assert out_bf16.shape == (batch, 2 * output_dim)
    assert jnp.allclose(out_bf16, ref, atol=7e-2, rtol=7e-2), "bf16 path mismatch"

    # 3) multi-tile path with a ragged last tile (grid=2: 16 + 8 rows) and the
    #    lane-dense padded-output variant.
    out_tiled = jax.block_until_ready(
        gaussian_mlp_forward(x, params, block_batch=16,
                             compute_dtype=jnp.float32, lane_dense_out=True))
    assert jnp.allclose(out_tiled, ref, atol=1e-4, rtol=1e-4), "tiled path mismatch"

    # TODO(synk): get_mean_std / get_distribution post-processing (softplus
    # clamp, Normal construction) are cheap glue outside forward(); left in JAX.
    print("KERNEL_OK")
</pallas_src>

<mosaic_0001>
module attributes {stable_mosaic.version = 11 : i64} {
  func.func @probe_kernel(%arg0: i32, %arg1: memref<8x128xf32, #tpu.memory_space<vmem>>, %arg2: memref<8x128xf32, #tpu.memory_space<vmem>>, %arg3: memref<8x128xf32, #tpu.memory_space<vmem>>) attributes {dimension_semantics = [#tpu.dimension_semantics<arbitrary>], iteration_bounds = array<i64: 2>, scalar_prefetch = 0 : i64, scratch_operands = 0 : i64, tpu.core_type = #tpu.core_type<tc>, window_params = [{transform_indices = @transform_0, window_bounds = array<i64: 8, 128>}, {pipeline_mode = #tpu.pipeline_mode<synchronous>, transform_indices = @transform_1, window_bounds = array<i64: 8, 128>}, {transform_indices = @transform_2, window_bounds = array<i64: 8, 128>}]} {
    %c0 = arith.constant 0 : index
    %c0_0 = arith.constant 0 : index
    %0 = vector.load %arg1[%c0, %c0_0] : memref<8x128xf32, #tpu.memory_space<vmem>>, vector<8x128xf32>
    %c0_1 = arith.constant 0 : index
    %c0_2 = arith.constant 0 : index
    %1 = vector.load %arg2[%c0_1, %c0_2] : memref<8x128xf32, #tpu.memory_space<vmem>>, vector<8x128xf32>
    %2 = arith.addf %0, %1 : vector<8x128xf32>
    %c0_3 = arith.constant 0 : index
    %c0_4 = arith.constant 0 : index
    %3 = vector.load %arg3[%c0_3, %c0_4] : memref<8x128xf32, #tpu.memory_space<vmem>>, vector<8x128xf32>
    tpu.vector_store %arg3[%c0_3, %c0_4], %2 {strides = array<i32>} : memref<8x128xf32, #tpu.memory_space<vmem>>, vector<8x128xf32>,
    return
  }
  func.func @transform_0(%arg0: i32) -> (i32, i32) {
    %c0_i32 = arith.constant 0 : i32
    %c0_i32_0 = arith.constant 0 : i32
    return %arg0, %c0_i32 : i32, i32
  }
  func.func @transform_1(%arg0: i32) -> (i32, i32) {
    %c0_i32 = arith.constant 0 : i32
    %c0_i32_0 = arith.constant 0 : i32
    %c0_i32_1 = arith.constant 0 : i32
    return %c0_i32, %c0_i32_0 : i32, i32
  }
  func.func @transform_2(%arg0: i32) -> (i32, i32) {
    %c0_i32 = arith.constant 0 : i32
    %c0_i32_0 = arith.constant 0 : i32
    return %arg0, %c0_i32 : i32, i32
  }
}

module attributes {stable_mosaic.version = 11 : i64} {
  func.func @_gaussian_mlp_kernel(%arg0: i32, %arg1: memref<24x128xf32, #tpu.memory_space<vmem>>, %arg2: memref<128x128xf32, #tpu.memory_space<vmem>>, %arg3: memref<1x128xf32, #tpu.memory_space<vmem>>, %arg4: memref<128x128xf32, #tpu.memory_space<vmem>>, %arg5: memref<1x128xf32, #tpu.memory_space<vmem>>, %arg6: memref<128x128xf32, #tpu.memory_space<vmem>>, %arg7: memref<1x128xf32, #tpu.memory_space<vmem>>, %arg8: memref<128x8xf32, #tpu.memory_space<vmem>>, %arg9: memref<1x8xf32, #tpu.memory_space<vmem>>, %arg10: memref<24x8xf32, #tpu.memory_space<vmem>>) attributes {dimension_semantics = [#tpu.dimension_semantics<parallel>], iteration_bounds = array<i64: 1>, scalar_prefetch = 0 : i64, scratch_operands = 0 : i64, tpu.core_type = #tpu.core_type<tc>, window_params = [{transform_indices = @transform_0, window_bounds = array<i64: 24, 128>}, {pipeline_mode = #tpu.pipeline_mode<synchronous>, transform_indices = @transform_1, window_bounds = array<i64: 128, 128>}, {pipeline_mode = #tpu.pipeline_mode<synchronous>, transform_indices = @transform_2, window_bounds = array<i64: 1, 128>}, {pipeline_mode = #tpu.pipeline_mode<synchronous>, transform_indices = @transform_3, window_bounds = array<i64: 128, 128>}, {pipeline_mode = #tpu.pipeline_mode<synchronous>, transform_indices = @transform_4, window_bounds = array<i64: 1, 128>}, {pipeline_mode = #tpu.pipeline_mode<synchronous>, transform_indices = @transform_5, window_bounds = array<i64: 128, 128>}, {pipeline_mode = #tpu.pipeline_mode<synchronous>, transform_indices = @transform_6, window_bounds = array<i64: 1, 128>}, {pipeline_mode = #tpu.pipeline_mode<synchronous>, transform_indices = @transform_7, window_bounds = array<i64: 128, 8>}, {pipeline_mode = #tpu.pipeline_mode<synchronous>, transform_indices = @transform_8, window_bounds = array<i64: 1, 8>}, {transform_indices = @transform_9, window_bounds = array<i64: 24, 8>}]} {
    %c0 = arith.constant 0 : index
    %c0_0 = arith.constant 0 : index
    %0 = vector.load %arg1[%c0, %c0_0] : memref<24x128xf32, #tpu.memory_space<vmem>>, vector<24x128xf32>
    %c0_1 = arith.constant 0 : index
    %c0_2 = arith.constant 0 : index
    %1 = vector.load %arg2[%c0_1, %c0_2] : memref<128x128xf32, #tpu.memory_space<vmem>>, vector<128x128xf32>
    %cst = arith.constant dense<0.000000e+00> : vector<24x128xf32>
    %2 = tpu.matmul %0, %1, %cst {dimension_numbers = #tpu.dot_dimension_numbers<[1], [0], [0], [1], [0, 0, 1, 1], [], []>, precision = #tpu.contract_precision<fp32>} : vector<24x128xf32>, vector<128x128xf32>, vector<24x128xf32> -> vector<24x128xf32>
    %c0_3 = arith.constant 0 : index
    %c0_4 = arith.constant 0 : index
    %3 = vector.load %arg3[%c0_3, %c0_4] : memref<1x128xf32, #tpu.memory_space<vmem>>, vector<1x128xf32>
    %4 = vector.broadcast %3 : vector<1x128xf32> to vector<24x128xf32>
    %5 = arith.addf %2, %4 : vector<24x128xf32>
    %cst_5 = arith.constant 0.000000e+00 : f32
    %6 = vector.broadcast %cst_5 : f32 to vector<24x128xf32>
    %7 = arith.maximumf %5, %6 : vector<24x128xf32>
    %c0_6 = arith.constant 0 : index
    %c0_7 = arith.constant 0 : index
    %8 = vector.load %arg4[%c0_6, %c0_7] : memref<128x128xf32, #tpu.memory_space<vmem>>, vector<128x128xf32>
    %cst_8 = arith.constant dense<0.000000e+00> : vector<24x128xf32>
    %9 = tpu.matmul %7, %8, %cst_8 {dimension_numbers = #tpu.dot_dimension_numbers<[1], [0], [0], [1], [0, 0, 1, 1], [], []>, precision = #tpu.contract_precision<fp32>} : vector<24x128xf32>, vector<128x128xf32>, vector<24x128xf32> -> vector<24x128xf32>
    %c0_9 = arith.constant 0 : index
    %c0_10 = arith.constant 0 : index
    %10 = vector.load %arg5[%c0_9, %c0_10] : memref<1x128xf32, #tpu.memory_space<vmem>>, vector<1x128xf32>
    %11 = vector.broadcast %10 : vector<1x128xf32> to vector<24x128xf32>
    %12 = arith.addf %9, %11 : vector<24x128xf32>
    %cst_11 = arith.constant 0.000000e+00 : f32
    %13 = vector.broadcast %cst_11 : f32 to vector<24x128xf32>
    %14 = arith.maximumf %12, %13 : vector<24x128xf32>
    %c0_12 = arith.constant 0 : index
    %c0_13 = arith.constant 0 : index
    %15 = vector.load %arg6[%c0_12, %c0_13] : memref<128x128xf32, #tpu.memory_space<vmem>>, vector<128x128xf32>
    %cst_14 = arith.constant dense<0.000000e+00> : vector<24x128xf32>
    %16 = tpu.matmul %14, %15, %cst_14 {dimension_numbers = #tpu.dot_dimension_numbers<[1], [0], [0], [1], [0, 0, 1, 1], [], []>, precision = #tpu.contract_precision<fp32>} : vector<24x128xf32>, vector<128x128xf32>, vector<24x128xf32> -> vector<24x128xf32>
    %c0_15 = arith.constant 0 : index
    %c0_16 = arith.constant 0 : index
    %17 = vector.load %arg7[%c0_15, %c0_16] : memref<1x128xf32, #tpu.memory_space<vmem>>, vector<1x128xf32>
    %18 = vector.broadcast %17 : vector<1x128xf32> to vector<24x128xf32>
    %19 = arith.addf %16, %18 : vector<24x128xf32>
    %cst_17 = arith.constant 0.000000e+00 : f32
    %20 = vector.broadcast %cst_17 : f32 to vector<24x128xf32>
    %21 = arith.maximumf %19, %20 : vector<24x128xf32>
    %c0_18 = arith.constant 0 : index
    %c0_19 = arith.constant 0 : index
    %22 = vector.load %arg8[%c0_18, %c0_19] : memref<128x8xf32, #tpu.memory_space<vmem>>, vector<128x8xf32>
    %cst_20 = arith.constant dense<0.000000e+00> : vector<24x8xf32>
    %23 = tpu.matmul %21, %22, %cst_20 {dimension_numbers = #tpu.dot_dimension_numbers<[1], [0], [0], [1], [0, 0, 1, 1], [], []>, precision = #tpu.contract_precision<fp32>} : vector<24x128xf32>, vector<128x8xf32>, vector<24x8xf32> -> vector<24x8xf32>
    %c0_21 = arith.constant 0 : index
    %c0_22 = arith.constant 0 : index
    %24 = vector.load %arg9[%c0_21, %c0_22] : memref<1x8xf32, #tpu.memory_space<vmem>>, vector<1x8xf32>
    %25 = vector.broadcast %24 : vector<1x8xf32> to vector<24x8xf32>
    %26 = arith.addf %23, %25 : vector<24x8xf32>
    %c0_23 = arith.constant 0 : index
    %c0_24 = arith.constant 0 : index
    %27 = vector.load %arg10[%c0_23, %c0_24] : memref<24x8xf32, #tpu.memory_space<vmem>>, vector<24x8xf32>
    tpu.vector_store %arg10[%c0_23, %c0_24], %26 {strides = array<i32>} : memref<24x8xf32, #tpu.memory_space<vmem>>, vector<24x8xf32>,
    return
  }
  func.func @transform_0(%arg0: i32) -> (i32, i32) {
    %c0_i32 = arith.constant 0 : i32
    %c0_i32_0 = arith.constant 0 : i32
    return %arg0, %c0_i32 : i32, i32
  }
  func.func @transform_1(%arg0: i32) -> (i32, i32) {
    %c0_i32 = arith.constant 0 : i32
    %c0_i32_0 = arith.constant 0 : i32
    %c0_i32_1 = arith.constant 0 : i32
    return %c0_i32, %c0_i32_0 : i32, i32
  }
  func.func @transform_2(%arg0: i32) -> (i32, i32) {
    %c0_i32 = arith.constant 0 : i32
    %c0_i32_0 = arith.constant 0 : i32
    %c0_i32_1 = arith.constant 0 : i32
    return %c0_i32, %c0_i32_0 : i32, i32
  }
  func.func @transform_3(%arg0: i32) -> (i32, i32) {
    %c0_i32 = arith.constant 0 : i32
    %c0_i32_0 = arith.constant 0 : i32
    %c0_i32_1 = arith.constant 0 : i32
    return %c0_i32, %c0_i32_0 : i32, i32
  }
  func.func @transform_4(%arg0: i32) -> (i32, i32) {
    %c0_i32 = arith.constant 0 : i32
    %c0_i32_0 = arith.constant 0 : i32
    %c0_i32_1 = arith.constant 0 : i32
    return %c0_i32, %c0_i32_0 : i32, i32
  }
  func.func @transform_5(%arg0: i32) -> (i32, i32) {
    %c0_i32 = arith.constant 0 : i32
    %c0_i32_0 = arith.constant 0 : i32
    %c0_i32_1 = arith.constant 0 : i32
    return %c0_i32, %c0_i32_0 : i32, i32
  }
  func.func @transform_6(%arg0: i32) -> (i32, i32) {
    %c0_i32 = arith.constant 0 : i32
    %c0_i32_0 = arith.constant 0 : i32
    %c0_i32_1 = arith.constant 0 : i32
    return %c0_i32, %c0_i32_0 : i32, i32
  }
  func.func @transform_7(%arg0: i32) -> (i32, i32) {
    %c0_i32 = arith.constant 0 : i32
    %c0_i32_0 = arith.constant 0 : i32
    %c0_i32_1 = arith.constant 0 : i32
    return %c0_i32, %c0_i32_0 : i32, i32
  }
  func.func @transform_8(%arg0: i32) -> (i32, i32) {
    %c0_i32 = arith.constant 0 : i32
    %c0_i32_0 = arith.constant 0 : i32
    %c0_i32_1 = arith.constant 0 : i32
    return %c0_i32, %c0_i32_0 : i32, i32
  }
  func.func @transform_9(%arg0: i32) -> (i32, i32) {
    %c0_i32 = arith.constant 0 : i32
    %c0_i32_0 = arith.constant 0 : i32
    return %arg0, %c0_i32 : i32, i32
  }
}

</mosaic_0001>

<bundles_post_ra>
// kernel: tpu_custom_call.1
= control target key start
LH: loop header
LB: loop body
LE: loop exit
PB: predicated region body
PF: predicated region fallthrough
CT: control target
= control target key end

     0   :  { %7 = vsyncpa [#allocation3], 0  ;;  %s690_s0 = inlined_call_operand.hbm [shape: f32[16,128], index: 0, kind: input, shape index: {}]   ;;  %s691_s1 = inlined_call_operand.hbm [shape: f32[8,128], index: 1, kind: input, shape index: {}]   ;;  %s692_s2 = inlined_call_operand.hbm [shape: f32[16,128], index: 2, kind: output, shape index: {}]  }
   0x1   :  { %9 = vsyncpa [#allocation3 + $0x1], 0 }
   0x2   :  { %10 = vsyncpa [#allocation6], 0 }
   0x3   :  { %11 = vsyncpa [#allocation4], 0 }
   0x4   :  { %13 = vsyncpa [#allocation4 + $0x1], 0  ;;  %s489_s9 = smov 0   ;;  %s491_s10 = smov 0  }
   0x5   :  { %s493_s11 = smov 0   ;;  %s495_s12 = smov 0  }
   0x6 LB: > { %s510_s13 = sadd.s32 4294967295, %s469_s12   ;;  %s270_s14 = sadd.s32 4294967294, %s469_s12   ;;  %s469_s12 = sphi %s495_s12, %s716_s12   ;;  %s465_s11 = sphi %s493_s11, %s715_s11   ;;  %s461_s10 = sphi %s491_s10, %s714_s10   ;;  %s457_s9 = sphi %s489_s9, %s713_s9  }
   0x7   : > { %p39_p0 = scmp.ne.s32.totalorder %s461_s10, %s457_s9  ;;  %p693_p1 = scmp.eq.s32.totalorder %s510_s13, 0 }
   0x8   : > { %p90_p3 = scmp.eq.s32.totalorder %s270_s14, 1  ;;  %p271_p5 = scmp.ge.s32.totalorder %s469_s12, 1 }
   0x9   : > { %p519_p4 = por %p693_p1, %p39_p0  ;;  %p97_p7 = scmp.lt.s32.totalorder %s469_s12, 3 }
   0xa   : > { %p524_p6 = por %p90_p3, %p39_p0  ;;  %s471_s18 = smov [#allocation5]  }
   0xb   : > { %s696_s15 = scalar_select %p519_p4, 1, 0 }
   0xc   : > { %s697_s16 = scalar_select %p524_p6, 1, 0 }
   0xd   : > { %p529_p8 = pnand %p271_p5, %p97_p7  ;;  %s110_s19 = sshll.u32 %s471_s18, 4  ;;  %s111_s19 = int_to_ptr.vmem [resolvable:$true] %s110_s19 }
   0xe   : > { %s537_s20 = sadd.s32 1, %s469_s12   ;;  %s26_s24 = sadd.s32 1, %s465_s11 }
   0xf   : > { %s698_s17 = scalar_select %p529_p8, 1, 0 }
  0x10   : > { %p292_p10 = pneg %p529_p8  ;;  %s23_s22 = ssub.s32 %s469_s12, %s537_s20 }
  0x11   : > { %p547_p12 = scmp.eq.s32.totalorder %s23_s22, 0  ;;  %s341_s27 = scalar_lea.hbm %s691_s1, 128 }
  0x12   : > { %p541_p11 = pnand %p292_p10, %p693_p1  ;;  %p342_p0 = scmp.ne.s32.totalorder %s691_s1, %s341_s27 }
  0x13   : > { %s700_s23 = scalar_select %p547_p12, 1, 0 }
  0x14   : > { %p343_p3 = pneg %p541_p11  ;;  %p348_p10 = scmp.lt.u32.totalorder %s341_s27, %s691_s1 }
  0x16   : > { %p344_p5 = pnand %p343_p3, %p342_p0 }
  0x18   : > { %p345_p7 = pneg %p344_p5 }
  0x1a   : > { %p350_p9 = pnand %p348_p10, %p345_p7 }
  0x1c   : > { %353 = shalt.err (!%p350_p9)
}
  0x1d   : > { %s354_s4 = scalar_lea.vmem %s111_s19, 128  ;;  %p362_p6 = scmp.lt.s32.totalorder %s111_s19, %s111_s19 }
  0x1e   : > { %p355_p1 = scmp.ne.s32.totalorder %s111_s19, %s354_s4  ;;  %p363_p4 = scmp.lt.s32.totalorder %s354_s4, %s354_s4 }
  0x20   : > { %p357_p2 = pnand %p355_p1, %p343_p3  ;;  %p364_p8 = por %p363_p4, %p362_p6 }
  0x22   : > { %p358_p13 = pneg %p357_p2 }
  0x24   : > { %p365_p12 = pnand %p364_p8, %p358_p13 }
  0x26   : > { %368 = shalt.err (!%p365_p12)
}
  0x27   : > { %295 = dma.hbm_to_vmem [thread:$0]  (!%p541_p11), %s691_s1, 128, %s111_s19, [#allocation6]  }
  0x28   : > { %p701_p1 = scmp.ne.s32.totalorder %s700_s23, 0  ;;  %p34_p2 = scmp.eq.s32.totalorder %s469_s12, 0 }
  0x29   : > { %p702_p4 = scmp.ne.s32.totalorder %s465_s11, %s461_s10  ;;  %p703_p6 = scmp.eq.s32.totalorder %s510_s13, 1 }
  0x2a   : > { %s573_s7 = scalar_select %p701_p1, %s465_s11, %s26_s24  }
  0x2b   : > { %p581_p8 = por %p703_p6, %p702_p4  ;;  %p305_p9 = scmp.lt.s32.totalorder %s469_s12, 2 }
  0x2c   : > { %s121_s14 = sand.u32 1, %s465_s11   ;;  %p705_p12 = pmov %p702_p4 }
  0x2d   : > { %s274_s18 = sshll.u32 %s121_s14, 3  ;;  %s275_s21 = sshll.u32 %s469_s12, 7 }
  0x2e   : > { %p35_p13 = por %p34_p2, %p705_p12  ;;  %s594_s19 = scalar_lea.hbm %s690_s0, %s275_s21 }
  0x2f   : > { %s125_s23 = scalar_lea.vmem [#allocation2], %s274_s18  ;;  %s122_s27 = scalar_lea.sflag [#allocation3], %s121_s14 }
  0x30   : > { %s132_s24 = sshll.u32 %s125_s23, 4  ;;  %p596_p11 = pnand %p305_p9, %p35_p13  ;;  %s600_s24 = int_to_ptr.vmem [resolvable:$true] %s132_s24 }
  0x31   : > { %s369_s28 = scalar_lea.hbm %s594_s19, 128  ;;  %s374_s3 = scalar_lea.hbm %s690_s0, 256 }
  0x32   : > { %p370_p0 = scmp.ne.s32.totalorder %s594_s19, %s369_s28  ;;  %p371_p3 = pneg %p596_p11 }
  0x33   : > { %p375_p10 = scmp.lt.u32.totalorder %s594_s19, %s690_s0  ;;  %p376_p1 = scmp.lt.u32.totalorder %s374_s3, %s369_s28 }
  0x34   : > { %p372_p5 = pnand %p371_p3, %p370_p0  ;;  %p378_p4 = scmp.lt.u32.totalorder %s369_s28, %s594_s19 }
  0x35   : > { %p377_p2 = por %p376_p1, %p375_p10 }
  0x36   : > { %p373_p7 = pneg %p372_p5 }
  0x37   : > { %p379_p6 = por %p378_p4, %p377_p2 }
  0x39   : > { %p380_p9 = pnand %p379_p6, %p373_p7 }
  0x3b   : > { %383 = shalt.err (!%p380_p9)
}
  0x3c   : > { %s384_s6 = scalar_lea.vmem %s600_s24, 128  ;;  %s472_s14 = smov [#allocation2]  }
  0x3d   : > { %p385_p12 = scmp.ne.s32.totalorder %s600_s24, %s384_s6  ;;  %s389_s18 = sshll.u32 %s472_s14, 4  ;;  %s390_s18 = int_to_ptr.vmem [resolvable:$false] %s389_s18 }
  0x3e   : > { %s391_s21 = scalar_lea.vmem %s390_s18, 256  ;;  %p392_p5 = scmp.lt.s32.totalorder %s600_s24, %s390_s18 }
  0x3f   : > { %p387_p13 = pnand %p385_p12, %p371_p3  ;;  %p393_p10 = scmp.lt.s32.totalorder %s391_s21, %s384_s6 }
  0x41   : > { %p388_p0 = pneg %p387_p13  ;;  %p394_p1 = por %p393_p10, %p392_p5 }
  0x43   : > { %p395_p2 = pnand %p394_p1, %p388_p0 }
  0x45   : > { %398 = shalt.err (!%p395_p2)
}
  0x46   : > { %299 = dma.hbm_to_vmem [thread:$0]  (!%p596_p11), %s594_s19, 128, %s600_s24, %s122_s27  }
  0x47   : > { %p707_p7 = scmp.ne.s32.totalorder %s698_s17, 0 }
  0x48   : > { %s630_s22 = sand.u32 (!%p707_p7), 1, %s461_s10   ;;  %p708_p3 = scmp.ne.s32.totalorder (!%p707_p7), %s696_s15, 0 }
  0x49   : > { %141 = sbr.rel (%p707_p7) target bundleno = 109 (0x6d), region = 28  ;;  %s277_s25 = sshll.u32 (!%p707_p7), %s630_s22, 3 }
  0x4a   : > { %s144_s23 = scalar_lea.sflag (!%p707_p7), [#allocation3], %s630_s22  ;;  %s147_s28 = scalar_lea.vmem (!%p707_p7), [#allocation2], %s277_s25 }
  0x50   : > { %444 = dma.done.wait (%p708_p3), %s144_s23, 128  }
  0x51   : > { %446 = vsyncadd (%p708_p3), %s144_s23, 4294967168  ;;  %p709_p4 = scmp.eq.s32.totalorder %s510_s13, 0 }
  0x53   : > { %448 = dma.done.wait (%p709_p4), [#allocation6], 128   ;;  %p710_p11 = pmov %p709_p4 }
  0x54   : > { %s171_s17 = scalar_lea.vmem [#allocation7], %s277_s25  ;;  %s281_s24 = sshll.u32 %s510_s13, 7  ;;  %v172_v0 = vld [vmem:[%s147_s28] sm:$0xff]  ;;  %v173_v1 = vld [vmem:[#allocation5] sm:$0xff] }
  0x55   : > { %450 = vsyncadd (%p710_p11), [#allocation6], 4294967168  ;;  %s190_s19 = sshll.u32 %s171_s17, 4  ;;  %v174_v2 = vadd.f32 %v173_v1, %v172_v0  ;;  %s648_s27 = scalar_lea.hbm %s692_s2, %s281_s24  ;;  %s643_s19 = int_to_ptr.vmem [resolvable:$true] %s190_s19 }
  0x56   : > { %s177_s29 = scalar_lea.sflag [#allocation4], %s630_s22  ;;  %s399_s30 = scalar_lea.vmem %s643_s19, 128 }
  0x57   : > { %175 = vst [vmem:[%s171_s17] sm:$0xff] %v174_v2  ;;  %p400_p6 = scmp.ne.s32.totalorder %s643_s19, %s399_s30  ;;  %s473_s13 = smov [#allocation7]  }
  0x58   : > { %s403_s3 = sshll.u32 %s473_s13, 4  ;;  %s404_s3 = int_to_ptr.vmem [resolvable:$false] %s403_s3 }
  0x59   : > { %p401_p9 = pnand %p400_p6, %p581_p8  ;;  %s405_s4 = scalar_lea.vmem %s404_s3, 256 }
  0x5a   : > { %p406_p13 = scmp.lt.s32.totalorder %s643_s19, %s404_s3  ;;  %p407_p0 = scmp.lt.s32.totalorder %s405_s4, %s399_s30 }
  0x5b   : > { %p402_p12 = pneg %p401_p9 }
  0x5c   : > { %p408_p5 = por %p407_p0, %p406_p13 }
  0x5e   : > { %p409_p10 = pnand %p408_p5, %p402_p12 }
  0x60   : > { %412 = shalt.err (!%p409_p10)
}
  0x61   : > { %s413_s5 = scalar_lea.hbm %s648_s27, 128  ;;  %s417_s18 = scalar_lea.hbm %s692_s2, 256 }
  0x62   : > { %p414_p1 = scmp.ne.s32.totalorder %s648_s27, %s413_s5  ;;  %p418_p3 = scmp.lt.u32.totalorder %s648_s27, %s692_s2 }
  0x63   : > { %p419_p4 = scmp.lt.u32.totalorder %s417_s18, %s413_s5  ;;  %p421_p6 = scmp.lt.u32.totalorder %s413_s5, %s648_s27 }
  0x64   : > { %p415_p2 = pnand %p414_p1, %p581_p8 }
  0x65   : > { %p420_p11 = por %p419_p4, %p418_p3 }
  0x66   : > { %p416_p7 = pneg %p415_p2 }
  0x67   : > { %p422_p9 = por %p421_p6, %p420_p11 }
  0x69   : > { %p423_p12 = pnand %p422_p9, %p416_p7 }
  0x6b   : > { %426 = shalt.err (!%p423_p12)
}
  0x6c   : > { %290 = dma.vmem_to_hbm [thread:$0]  (%p581_p8), %s643_s19, 128, %s648_s27, %s177_s29  }
  0x6d PF: > { %s202_s25 = sand.u32 1, %s457_s9   ;;  %p711_p13 = scmp.ne.s32.totalorder %s697_s16, 0 }
  0x6e   : > { %p712_p0 = scmp.ge.s32.totalorder %s469_s12, 2  ;;  %s203_s23 = scalar_lea.sflag [#allocation4], %s202_s25 }
  0x70   : > { %p301_p5 = pnand %p712_p0, %p711_p13 }
  0x72   : > { %452 = dma.done.wait (!%p301_p5), %s203_s23, 128  }
  0x73   : > { %454 = vsyncadd (!%p301_p5), %s203_s23, 4294967168  ;;  %p16_p10 = scmp.ge.s32.totalorder %s537_s20, 4   ;;  %s713_s9 = smov %s461_s10 }
  0x74   : > { %s714_s10 = smov %s465_s11  ;;  %s715_s11 = smov %s573_s7 }
  0x75   : > { %s716_s12 = smov %s537_s20  ;;  %18 = sbr.rel (!%p16_p10) target bundleno = 6 (0x6), region = 77 }
  0x7c   :  { %208 = vsyncpa [#allocation3], 1 }
  0x7d   :  { %210 = vsyncpa [#allocation3 + $0x1], 1 }
  0x7e   :  { %211 = vsyncpa [#allocation6], 1 }
  0x7f   :  { %212 = vsyncpa [#allocation4], 1 }
  0x80   :  { %214 = vsyncpa [#allocation4 + $0x1], 1 }

// kernel: fwd.1
= control target key start
LH: loop header
LB: loop body
LE: loop exit
PB: predicated region body
PF: predicated region fallthrough
CT: control target
= control target key end

     0   :  { %v5207_v0 = vmov 0.0|0.0   ;;  %vm5208_vm0 = vmmov 0   ;;  %v6814_v4 = vmov 0.0   ;;  %vm3044_vm1 = vcmask 64512   ;;  %s6802_s1 = inlined_call_operand.vmem [shape: f32[128,128], index: 1, kind: input, shape index: {}]   ;;  %s6803_s0 = inlined_call_operand.vmem [shape: f32[24,128], index: 0, kind: input, shape index: {}]   ;;  %s6804_s3 = inlined_call_operand.vmem [shape: f32[128,128], index: 3, kind: input, shape index: {}]   ;;  %s6805_s2 = inlined_call_operand.vmem [shape: f32[1,128], index: 2, kind: input, shape index: {}]   ;;  %s6806_s5 = inlined_call_operand.vmem [shape: f32[128,128], index: 5, kind: input, shape index: {}]   ;;  %s6807_s4 = inlined_call_operand.vmem [shape: f32[1,128], index: 4, kind: input, shape index: {}]   ;;  %s6808_s7 = inlined_call_operand.vmem [shape: f32[128,8], index: 7, kind: input, shape index: {}]   ;;  %s6809_s6 = inlined_call_operand.vmem [shape: f32[1,128], index: 6, kind: input, shape index: {}]   ;;  %s6810_s8 = inlined_call_operand.vmem [shape: f32[1,8], index: 8, kind: input, shape index: {}]   ;;  %s6811_s9 = inlined_call_operand.vmem [shape: f32[24,8], index: 9, kind: output, shape index: {}]  }
   0x1   :  { %4496 = vmatprep.subr.bf16.mxu0 %v5207_v0  ;;  %v35_v1 = vld [vmem:[%s6802_s1] sm:$0xff]  ;;  %v36_v2 = vld [vmem:[%s6802_s1 + $0x8] sm:$0xff]  ;;  %v37_v3 = vld [vmem:[%s6802_s1 + $0x10] sm:$0xff]  ;;  %3544 = vmatprep.mubr.msk.f32.mxu0 %vm5208_vm0, %v6814_v4 }
   0x2   :  { %v59_v5 = vand.u32 4294901760, %v35_v1  ;;  %v62_v6 = vand.u32 4294901760, %v36_v2  ;;  %v38_v7 = vld [vmem:[%s6802_s1 + $0x18] sm:$0xff]  ;;  %v65_v8 = vand.u32 4294901760, %v37_v3  ;;  %4640 = vmatprep.subr.bf16.mxu1 %v5207_v0  ;;  %3790 = vmatprep.mubr.msk.f32.mxu1 %vm5208_vm0, %v6814_v4  ;;  %v39_v10 = vld [vmem:[%s6802_s1 + $0x20] sm:$0xff]  ;;  %v40_v11 = vld [vmem:[%s6802_s1 + $0x28] sm:$0xff] }
   0x3   :  { %v68_v9 = vand.u32 4294901760, %v38_v7  ;;  %v71_v14 = vand.u32 4294901760, %v39_v10  ;;  %v74_v15 = vand.u32 4294901760, %v40_v11  ;;  %v41_v16 = vld [vmem:[%s6802_s1 + $0x30] sm:$0xff]  ;;  %v42_v17 = vld [vmem:[%s6802_s1 + $0x38] sm:$0xff]  ;;  %v32_v21 = vld [vmem:[%s6803_s0] sm:$0xff] }
   0x4   :  { %v5284_v12 = vpack.c.bf16 %v62_v6, %v59_v5  ;;  %v77_v19 = vand.u32 4294901760, %v41_v16  ;;  %v80_v20 = vand.u32 4294901760, %v42_v17  ;;  %v43_v22 = vld [vmem:[%s6802_s1 + $0x40] sm:$0xff]  ;;  %v44_v23 = vld [vmem:[%s6802_s1 + $0x48] sm:$0xff]  ;;  %v5309_v24 = vand.u32 4294901760, %v32_v21  ;;  %v45_v30 = vld [vmem:[%s6802_s1 + $0x50] sm:$0xff] }
   0x5   :  { %v5287_v13 = vpack.c.bf16 %v68_v9, %v65_v8  ;;  %v5297_v18 = vpack.c.bf16 %v74_v15, %v71_v14  ;;  %v83_v26 = vand.u32 4294901760, %v43_v22  ;;  %v86_v27 = vand.u32 4294901760, %v44_v23  ;;  %v46_v31 = vld [vmem:[%s6802_s1 + $0x58] sm:$0xff]  ;;  %v47_v33 = vld [vmem:[%s6802_s1 + $0x60] sm:$0xff]  ;;  %v48_v39 = vld [vmem:[%s6802_s1 + $0x68] sm:$0xff] }
   0x6   :  { %4498 = vmatpush3.bf16.msra.mxu0 %v5284_v12  ;;  %v5312_v25 = vpack.c.bf16 %v80_v20, %v77_v19  ;;  %v5314_v28 = vsub.f32 %v35_v1, %v59_v5  ;;  %v5316_v29 = vsub.f32 %v36_v2, %v62_v6  ;;  %v5325_v32 = vsub.f32 %v37_v3, %v65_v8  ;;  %v33_v40 = vld [vmem:[%s6803_s0 + $0x8] sm:$0xff]  ;;  %v49_v43 = vld [vmem:[%s6802_s1 + $0x70] sm:$0xff]  ;;  %v50_v44 = vld [vmem:[%s6802_s1 + $0x78] sm:$0xff] }
   0x7   :  { %4499 = vmatprep.subr.bf16.mxu0 %v5207_v0  ;;  %v5331_v34 = vsub.f32 %v32_v21, %v5309_v24  ;;  %v5333_v35 = vsub.f32 %v38_v7, %v68_v9  ;;  %v5336_v36 = vpack.c.bf16 %v86_v27, %v83_v26  ;;  %v89_v37 = vand.u32 4294901760, %v45_v30  ;;  %v34_v55 = vld [vmem:[%s6803_s0 + $0x10] sm:$0xff] }
   0x8   :  { %v92_v38 = vand.u32 4294901760, %v46_v31  ;;  %v5344_v41 = vsub.f32 %v39_v10, %v71_v14  ;;  %v5346_v42 = vsub.f32 %v40_v11, %v74_v15  ;;  %v172_v45 = vand.u32 4294901760, %v5314_v28 }
   0x9   :  { %v179_v46 = vand.u32 4294901760, %v5316_v29  ;;  %v5357_v47 = vsub.f32 %v41_v16, %v77_v19  ;;  %v5359_v48 = vsub.f32 %v42_v17, %v80_v20  ;;  %v95_v49 = vand.u32 4294901760, %v47_v33 }
   0xa   :  { %4501 = vmatpush3.bf16.msra.mxu0 %v5287_v13  ;;  %v186_v50 = vand.u32 4294901760, %v5325_v32  ;;  %v5362_v51 = vsub.f32 %v43_v22, %v83_v26  ;;  %v98_v52 = vand.u32 4294901760, %v48_v39  ;;  %v6812_v53 = vand.u32 4294901760, %v5331_v34 }
   0xb   :  { %4502 = vmatprep.subr.bf16.mxu0 %v5207_v0  ;;  %v5365_v54 = vand.u32 4294901760, %v33_v40  ;;  %v5371_v56 = vsub.f32 %v44_v23, %v86_v27  ;;  %v5373_v57 = vpack.c.bf16 %v92_v38, %v89_v37  ;;  %v101_v58 = vand.u32 4294901760, %v49_v43 }
   0xc   :  { %v104_v59 = vand.u32 4294901760, %v50_v44  ;;  %v5376_v60 = vsub.f32 %v45_v30, %v89_v37  ;;  %v5378_v61 = vsub.f32 %v46_v31, %v92_v38  ;;  %v173_v62 = vsub.f32 %v5314_v28, %v172_v45 }
   0xd   :  { %v180_v63 = vsub.f32 %v5316_v29, %v179_v46  ;;  %v187_v1 = vsub.f32 %v5325_v32, %v186_v50  ;;  %v193_v2 = vand.u32 4294901760, %v5333_v35  ;;  %v5385_v3 = vsub.f32 %v33_v40, %v5365_v54 }
   0xe   :  { %4504 = vmatpush3.bf16.msra.mxu0 %v5297_v18  ;;  %v5387_v5 = vand.u32 4294901760, %v34_v55  ;;  %v5389_v6 = vpack.c.bf16 %v98_v52, %v95_v49  ;;  %v5391_v7 = vsub.f32 %v47_v33, %v95_v49  ;;  %v142_v8 = vsub.f32 %v5331_v34, %v6812_v53 }
   0xf   :  { %4505 = vmatprep.subr.bf16.mxu0 %v5207_v0  ;;  %v200_v9 = vand.u32 4294901760, %v5344_v41  ;;  %v5398_v10 = vsub.f32 %v48_v39, %v98_v52  ;;  %v5400_v11 = vpack.c.bf16 %v104_v59, %v101_v58  ;;  %v5402_v14 = vsub.f32 %v49_v43, %v101_v58 }
  0x10   :  { %v5404_v15 = vsub.f32 %v50_v44, %v104_v59  ;;  %v174_v16 = vand.u32 4294901760, %v173_v62  ;;  %v181_v17 = vand.u32 4294901760, %v180_v63  ;;  %v207_v19 = vand.u32 4294901760, %v5346_v42 }
  0x11   :  { %v214_v20 = vand.u32 4294901760, %v5357_v47  ;;  %v188_v21 = vand.u32 4294901760, %v187_v1  ;;  %v194_v22 = vsub.f32 %v5333_v35, %v193_v2  ;;  %v6813_v23 = vand.u32 4294901760, %v5385_v3 }
  0x12   :  { %4507 = vmatpush3.bf16.msra.mxu0 %v5312_v25  ;;  %v5412_v26 = vsub.f32 %v34_v55, %v5387_v5  ;;  %v143_v27 = vand.u32 4294901760, %v142_v8  ;;  %v201_v30 = vsub.f32 %v5344_v41, %v200_v9  ;;  %v221_v31 = vand.u32 4294901760, %v5359_v48 }
  0x13   :  { %4508 = vmatprep.subr.bf16.mxu0 %v5207_v0  ;;  %v228_v33 = vand.u32 4294901760, %v5362_v51  ;;  %v235_v37 = vand.u32 4294901760, %v5371_v56  ;;  %v242_v38 = vand.u32 4294901760, %v5376_v60  ;;  %v249_v39 = vand.u32 4294901760, %v5378_v61 }
  0x14   :  { %v256_v40 = vand.u32 4294901760, %v5391_v7  ;;  %v263_v43 = vand.u32 4294901760, %v5398_v10  ;;  %v270_v44 = vand.u32 4294901760, %v5402_v14  ;;  %v277_v49 = vand.u32 4294901760, %v5404_v15 }
  0x15   :  { %v5426_v52 = vpack.c.bf16 %v179_v46, %v172_v45  ;;  %v152_v55 = vsub.f32 %v5385_v3, %v6813_v23  ;;  %v161_v58 = vand.u32 4294901760, %v5412_v26  ;;  %v5432_v59 = vpack.c.bf16 %v193_v2, %v186_v50 }
  0x16   :  { %4510 = vmatpush3.bf16.msra.mxu0 %v5336_v36  ;;  %v5434_v62 = vpack.c.bf16 %v207_v19, %v200_v9  ;;  %v5436_v63 = vpack.c.bf16 %v221_v31, %v214_v20  ;;  %v5438_v1 = vpack.c.bf16 %v235_v37, %v228_v33  ;;  %v5440_v8 = vpack.c.bf16 %v249_v39, %v242_v38 }
  0x17   :  { %4511 = vmatprep.subr.bf16.mxu0 %v5207_v0  ;;  %v5442_v53 = vpack.c.bf16 %v263_v43, %v256_v40  ;;  %v4521_v45 = vpack.c.bf16 %v181_v17, %v174_v16  ;;  %v195_v46 = vand.u32 4294901760, %v194_v22  ;;  %v208_v23 = vsub.f32 %v5346_v42, %v207_v19 }
  0x18   :  { %6858 = vst [vmem:[#allocation2_spill] sm:$0xff] %v5438_v1  ;;  %6859 = vst [vmem:[#allocation3_spill] sm:$0xff] %v5440_v8  ;;  %v5446_v4 = vpack.c.bf16 %v277_v49, %v270_v44  ;;  %v215_v50 = vsub.f32 %v5357_v47, %v214_v20  ;;  %v153_v2 = vand.u32 4294901760, %v152_v55  ;;  %v162_v9 = vsub.f32 %v5412_v26, %v161_v58 }
  0x19   :  { %6860 = vst [vmem:[#allocation4_spill] sm:$0xff] %v5442_v53  ;;  %v4524_v53 = vpack.c.bf16 %v195_v46, %v188_v21  ;;  %v202_v8 = vand.u32 4294901760, %v201_v30  ;;  %v209_v1 = vand.u32 4294901760, %v208_v23  ;;  %v222_v16 = vsub.f32 %v5359_v48, %v221_v31 }
  0x1a   :  { %4513 = vmatpush3.bf16.msra.mxu0 %v5373_v57  ;;  %v6861_v17 = vmov 0.0   ;;  %v229_v19 = vsub.f32 %v5362_v51, %v228_v33  ;;  %v163_v20 = vand.u32 4294901760, %v162_v9  ;;  %v243_v31 = vsub.f32 %v5376_v60, %v242_v38 }
  0x1b   :  { %4514 = vmatprep.subr.bf16.mxu0 %v5207_v0  ;;  %v4527_v22 = vpack.c.bf16 %v209_v1, %v202_v8  ;;  %v223_v55 = vand.u32 4294901760, %v222_v16  ;;  %v250_v33 = vsub.f32 %v5378_v61, %v249_v39  ;;  %v264_v46 = vsub.f32 %v5398_v10, %v263_v43 }
  0x1c   :  { %v230_v21 = vand.u32 4294901760, %v229_v19  ;;  %v244_v1 = vand.u32 4294901760, %v243_v31  ;;  %v271_v39 = vsub.f32 %v5402_v14, %v270_v44  ;;  %v278_v9 = vsub.f32 %v5404_v15, %v277_v49  ;;  %v796_v31 = vld [vmem:[%s6804_s3 + $0x40] sm:$0xff] }
  0x1d   :  { %v251_v8 = vand.u32 4294901760, %v250_v33  ;;  %v4548_v44 = vpack.c.bf16 %v5333_v35, %v5325_v32  ;;  %v4551_v49 = vpack.c.bf16 %v5346_v42, %v5344_v41  ;;  %v789_v32 = vld [vmem:[%s6804_s3 + $0x8] sm:$0xff]  ;;  %v790_v35 = vld [vmem:[%s6804_s3 + $0x10] sm:$0xff] }
  0x1e   :  { %4516 = vmatpush3.bf16.msra.mxu0 %v5389_v6  ;;  %v272_v16 = vand.u32 4294901760, %v271_v39  ;;  %v279_v19 = vand.u32 4294901760, %v278_v9  ;;  %v815_v42 = vand.u32 4294901760, %v789_v32 }
  0x1f   :  { %4517 = vmatprep.subr.bf16.mxu0 %v5207_v0  ;;  %v4536_v38 = vpack.c.bf16 %v251_v8, %v244_v1  ;;  %v797_v8 = vld [vmem:[%s6804_s3 + $0x48] sm:$0xff] }
  0x20   :  { %v4542_v43 = vpack.c.bf16 %v279_v19, %v272_v16  ;;  %v836_v16 = vand.u32 4294901760, %v796_v31  ;;  %v839_v19 = vand.u32 4294901760, %v797_v8 }
  0x22   :  { %4519 = vmatpush3.bf16.msra.mxu0 %v5400_v11 }
  0x23   :  { %4520 = vmatprep.subr.bf16.mxu0 %v5207_v0 }
  0x25   :  { %3545 = vmatmul.mubr.f32.vlgmr.msra.gmra.mrb[0].mxu0 %v143_v27  ;;  %v216_v27 = vand.u32 4294901760, %v215_v50 }
  0x26   :  { %4522 = vmatpush3.bf16.msra.mxu0 %v4521_v45  ;;  %3547 = vmatprep.mubr.msk.f32.mxu0 %vm5208_vm0, %v6861_v17  ;;  %v236_v45 = vsub.f32 %v5371_v56, %v235_v37 }
  0x27   :  { %4523 = vmatprep.subr.bf16.mxu0 %v5207_v0  ;;  %v4530_v23 = vpack.c.bf16 %v223_v55, %v216_v27  ;;  %v793_v27 = vld [vmem:[%s6804_s3 + $0x28] sm:$0xff] }
  0x28   :  { %v237_v30 = vand.u32 4294901760, %v236_v45 }
  0x29   :  { %3548 = vmatmul.mubr.f32.gmra.mrb[2].mxu0 %v153_v2  ;;  %v265_v2 = vand.u32 4294901760, %v264_v46  ;;  %v4557_v46 = vpack.c.bf16 %v5371_v56, %v5362_v51  ;;  %v5551_v56 = vsub.f32 %v796_v31, %v836_v16 }
  0x2a   :  { %4525 = vmatpush3.bf16.msra.mxu0 %v4524_v53  ;;  %3550 = vmatprep.mubr.msk.f32.mxu0 %vm5208_vm0, %v6861_v17  ;;  %v257_v53 = vsub.f32 %v5391_v7, %v256_v40  ;;  %v4533_v37 = vpack.c.bf16 %v237_v30, %v230_v21  ;;  %v827_v21 = vand.u32 4294901760, %v793_v27  ;;  %v795_v30 = vld [vmem:[%s6804_s3 + $0x38] sm:$0xff] }
  0x2b   :  { %4526 = vmatprep.subr.bf16.mxu0 %v5207_v0 }
  0x2c   :  { %v258_v50 = vand.u32 4294901760, %v257_v53  ;;  %v5544_v39 = vsub.f32 %v793_v27, %v827_v21 }
  0x2d   :  { %3551 = vmatmul.mubr.f32.gmra.mrb[4].mxu0 %v163_v20  ;;  %v4545_v20 = vpack.c.bf16 %v5316_v29, %v5314_v28  ;;  %v4554_v28 = vpack.c.bf16 %v5359_v48, %v5357_v47  ;;  %v788_v29 = vld [vmem:[%s6804_s3] sm:$0xff]  ;;  %v791_v47 = vld [vmem:[%s6804_s3 + $0x18] sm:$0xff]  ;;  %v818_v48 = vand.u32 4294901760, %v790_v35 }
  0x2e   :  { %4528 = vmatpush3.bf16.msra.mxu0 %v4527_v22  ;;  %3585 = vmatprep.mubr.msk.f32.mxu0 %vm5208_vm0, %v6861_v17  ;;  %v4539_v40 = vpack.c.bf16 %v265_v2, %v258_v50  ;;  %v812_v41 = vand.u32 4294901760, %v788_v29  ;;  %v792_v22 = vld [vmem:[%s6804_s3 + $0x20] sm:$0xff]  ;;  %v821_v55 = vand.u32 4294901760, %v791_v47 }
  0x2f   :  { %4529 = vmatprep.subr.bf16.mxu0 %v5207_v0  ;;  %v824_v45 = vand.u32 4294901760, %v792_v22  ;;  %v5529_v1 = vsub.f32 %v790_v35, %v818_v48 }
  0x30   :  { %v5523_v33 = vpack.c.bf16 %v815_v42, %v812_v41  ;;  %v5525_v53 = vsub.f32 %v788_v29, %v812_v41  ;;  %v5536_v50 = vpack.c.bf16 %v821_v55, %v818_v48 }
  0x31   :  { %v5540_v2 = vsub.f32 %v792_v22, %v824_v45  ;;  %v6831_v22 = vand.u32 4294901760, %v5529_v1 }
  0x32   :  { %4531 = vmatpush3.bf16.msra.mxu0 %v4530_v23  ;;  %v794_v23 = vld [vmem:[%s6804_s3 + $0x30] sm:$0xff]  ;;  %4642 = vmatpush3.bf16.msra.mxu1 %v5523_v33 }
  0x33   :  { %4532 = vmatprep.subr.bf16.mxu0 %v5207_v0  ;;  %v830_v9 = vand.u32 4294901760, %v794_v23  ;;  %4643 = vmatprep.subr.bf16.mxu1 %v5207_v0 }
  0x36   :  { %4534 = vmatpush3.bf16.msra.mxu0 %v4533_v37  ;;  %v5527_v37 = vsub.f32 %v789_v32, %v815_v42  ;;  %4645 = vmatpush3.bf16.msra.mxu1 %v5536_v50 }
  0x37   :  { %4535 = vmatprep.subr.bf16.mxu0 %v5207_v0  ;;  %4646 = vmatprep.subr.bf16.mxu1 %v5207_v0 }
  0x3a   :  { %4537 = vmatpush3.bf16.msra.mxu0 %v4536_v38  ;;  %v5538_v38 = vsub.f32 %v791_v47, %v821_v55 }
  0x3b   :  { %4538 = vmatprep.subr.bf16.mxu0 %v5207_v0 }
  0x3c   :  { %v6830_v27 = vand.u32 4294901760, %v5538_v38 }
  0x3e   :  { %4540 = vmatpush3.bf16.msra.mxu0 %v4539_v40  ;;  %v833_v40 = vand.u32 4294901760, %v795_v30 }
  0x3f   :  { %4541 = vmatprep.subr.bf16.mxu0 %v5207_v0 }
  0x40   :  { %v5549_v51 = vsub.f32 %v795_v30, %v833_v40  ;;  %v5566_v29 = vpack.c.bf16 %v833_v40, %v830_v9 }
  0x42   :  { %4543 = vmatpush3.bf16.msra.mxu0 %v4542_v43  ;;  %v5547_v43 = vsub.f32 %v794_v23, %v830_v9  ;;  %v6827_v9 = vand.u32 4294901760, %v5544_v39 }
  0x43   :  { %4544 = vmatprep.subr.bf16.mxu0 %v5207_v0 }
  0x45   :  { %3586 = vmatmul.mubr.f32.vlgmr.msra.gmra.mrb[0].mxu0 %v5309_v24 }
  0x46   :  { %4546 = vmatpush3.bf16.msra.mxu0 %v4545_v20  ;;  %3588 = vmatprep.mubr.msk.f32.mxu0 %vm5208_vm0, %v6861_v17  ;;  %v4560_v20 = vpack.c.bf16 %v5378_v61, %v5376_v60  ;;  %v4566_v60 = vpack.c.bf16 %v5404_v15, %v5402_v14  ;;  %v5573_v61 = vpack.c.bf16 %v839_v19, %v836_v16  ;;  %v6866_v14 = vld [vmem:[#allocation4_spill] sm:$0xff] }
  0x47   :  { %4547 = vmatprep.subr.bf16.mxu0 %v5207_v0 }
  0x49   :  { %3589 = vmatmul.mubr.f32.gmra.mrb[2].mxu0 %v5365_v54 }
  0x4a   :  { %4549 = vmatpush3.bf16.msra.mxu0 %v4548_v44  ;;  %3591 = vmatprep.mubr.msk.f32.mxu0 %vm5208_vm0, %v6861_v17  ;;  %v5555_v44 = vsub.f32 %v797_v8, %v839_v19  ;;  %v961_v19 = vsub.f32 %v5544_v39, %v6827_v9  ;;  %v1550_v9 = vld [vmem:[%s6806_s5 + $0x48] sm:$0xff] }
  0x4b   :  { %4550 = vmatprep.subr.bf16.mxu0 %v5207_v0 }
  0x4d   :  { %3592 = vmatmul.mubr.f32.gmra.mrb[4].mxu0 %v5387_v5 }
  0x4e   :  { %4552 = vmatpush3.bf16.msra.mxu0 %v4551_v49  ;;  %3626 = vmatprep.mubr.msk.f32.mxu0 %vm5208_vm0, %v6861_v17  ;;  %v5559_v49 = vpack.c.bf16 %v827_v21, %v824_v45  ;;  %v940_v45 = vsub.f32 %v5529_v1, %v6831_v22  ;;  %v947_v21 = vsub.f32 %v5538_v38, %v6830_v27 }
  0x4f   :  { %4553 = vmatprep.subr.bf16.mxu0 %v5207_v0 }
  0x50   :  { %4648 = vmatpush3.bf16.msra.mxu1 %v5559_v49  ;;  %v941_v31 = vand.u32 4294901760, %v940_v45  ;;  %v948_v8 = vand.u32 4294901760, %v947_v21 }
  0x51   :  { %4649 = vmatprep.subr.bf16.mxu1 %v5207_v0 }
  0x52   :  { %4555 = vmatpush3.bf16.msra.mxu0 %v4554_v28  ;;  %v4563_v28 = vpack.c.bf16 %v5398_v10, %v5391_v7  ;;  %v6862_v7 = vand.u32 4294901760, %v5331_v34  ;;  %v6863_v10 = vand.u32 4294901760, %v5385_v3  ;;  %v5728_v40 = vpack.c.bf16 %v948_v8, %v941_v31 }
  0x53   :  { %4556 = vmatprep.subr.bf16.mxu0 %v5207_v0 }
  0x54   :  { %4651 = vmatpush3.bf16.msra.mxu1 %v5566_v29 }
  0x55   :  { %4652 = vmatprep.subr.bf16.mxu1 %v5207_v0 }
  0x56   :  { %4558 = vmatpush3.bf16.msra.mxu0 %v4557_v46  ;;  %v6828_v46 = vand.u32 4294901760, %v5540_v2 }
  0x57   :  { %4559 = vmatprep.subr.bf16.mxu0 %v5207_v0 }
  0x58   :  { %4654 = vmatpush3.bf16.msra.mxu1 %v5573_v61  ;;  %v954_v16 = vsub.f32 %v5540_v2, %v6828_v46 }
  0x59   :  { %4655 = vmatprep.subr.bf16.mxu1 %v5207_v0 }
  0x5a   :  { %4561 = vmatpush3.bf16.msra.mxu0 %v4560_v20  ;;  %v955_v20 = vand.u32 4294901760, %v954_v16 }
  0x5b   :  { %4562 = vmatprep.subr.bf16.mxu0 %v5207_v0 }
  0x5e   :  { %4564 = vmatpush3.bf16.msra.mxu0 %v4563_v28  ;;  %v962_v28 = vand.u32 4294901760, %v961_v19 }
  0x5f   :  { %4565 = vmatprep.subr.bf16.mxu0 %v5207_v0 }
  0x62   :  { %4567 = vmatpush3.bf16.msra.mxu0 %v4566_v60  ;;  %v6825_v60 = vand.u32 4294901760, %v5547_v43 }
  0x63   :  { %4568 = vmatprep.subr.bf16.mxu0 %v5207_v0 }
  0x65   :  { %3627 = vmatmul.mubr.f32.vlgmr.msra.gmra.mrb[0].mxu0 %v5331_v34  ;;  %v6864_v34 = vld [vmem:[#allocation2_spill] sm:$0xff] }
  0x66   :  { %4570 = vmatpush3.bf16.msra.mxu0 %v5284_v12  ;;  %3629 = vmatprep.mubr.msk.f32.mxu0 %vm5208_vm0, %v6861_v17 }
  0x67   :  { %4571 = vmatprep.subr.bf16.mxu0 %v5207_v0 }
  0x69   :  { %3630 = vmatmul.mubr.f32.gmra.mrb[2].mxu0 %v5385_v3  ;;  %v6865_v3 = vld [vmem:[#allocation3_spill] sm:$0xff] }
  0x6a   :  { %4573 = vmatpush3.bf16.msra.mxu0 %v5287_v13  ;;  %3632 = vmatprep.mubr.msk.f32.mxu0 %vm5208_vm0, %v6861_v17 }
  0x6b   :  { %4574 = vmatprep.subr.bf16.mxu0 %v5207_v0 }
  0x6d   :  { %3633 = vmatmul.mubr.f32.gmra.mrb[4].mxu0 %v5412_v26 }
  0x6e   :  { %4576 = vmatpush3.bf16.msra.mxu0 %v5297_v18  ;;  %3667 = vmatprep.mubr.msk.f32.mxu0 %vm5208_vm0, %v6861_v17 }
  0x6f   :  { %4577 = vmatprep.subr.bf16.mxu0 %v5207_v0 }
  0x72   :  { %4579 = vmatpush3.bf16.msra.mxu0 %v5312_v25 }
  0x73   :  { %4580 = vmatprep.subr.bf16.mxu0 %v5207_v0 }
  0x76   :  { %4582 = vmatpush3.bf16.msra.mxu0 %v5336_v36 }
  0x77   :  { %4583 = vmatprep.subr.bf16.mxu0 %v5207_v0 }
  0x7a   :  { %4585 = vmatpush3.bf16.msra.mxu0 %v5373_v57 }
  0x7b   :  { %4586 = vmatprep.subr.bf16.mxu0 %v5207_v0 }
  0x7e   :  { %4588 = vmatpush3.bf16.msra.mxu0 %v5389_v6 }
  0x7f   :  { %4589 = vmatprep.subr.bf16.mxu0 %v5207_v0 }
  0x82   :  { %4591 = vmatpush3.bf16.msra.mxu0 %v5400_v11 }
  0x83   :  { %4592 = vmatprep.subr.bf16.mxu0 %v5207_v0 }
  0x85   :  { %3668 = vmatmul.mubr.f32.vlgmr.msra.gmra.mrb[0].mxu0 %v6862_v7  ;;  %v6824_v7 = vand.u32 4294901760, %v5549_v51 }
  0x86   :  { %4594 = vmatpush3.bf16.msra.mxu0 %v5426_v52  ;;  %3670 = vmatprep.mubr.msk.f32.mxu0 %vm5208_vm0, %v6861_v17 }
  0x87   :  { %4595 = vmatprep.subr.bf16.mxu0 %v5207_v0 }
  0x89   :  { %3671 = vmatmul.mubr.f32.gmra.mrb[2].mxu0 %v6863_v10  ;;  %v5738_v10 = vpack.c.bf16 %v962_v28, %v955_v20 }
  0x8a   :  { %4597 = vmatpush3.bf16.msra.mxu0 %v5432_v59  ;;  %3673 = vmatprep.mubr.msk.f32.mxu0 %vm5208_vm0, %v6861_v17  ;;  %v925_v59 = vand.u32 4294901760, %v5525_v53 }
  0x8b   :  { %4598 = vmatprep.subr.bf16.mxu0 %v5207_v0 }
  0x8c   :  { %v926_v32 = vsub.f32 %v5525_v53, %v925_v59 }
  0x8d   :  { %3674 = vmatmul.mubr.f32.gmra.mrb[4].mxu0 %v161_v58 }
  0x8e   :  { %4600 = vmatpush3.bf16.msra.mxu0 %v5434_v62  ;;  %3708 = vmatprep.mubr.msk.f32.mxu0 %vm5208_vm0, %v6861_v17  ;;  %v932_v62 = vand.u32 4294901760, %v5527_v37  ;;  %v927_v47 = vand.u32 4294901760, %v926_v32 }
  0x8f   :  { %4601 = vmatprep.subr.bf16.mxu0 %v5207_v0 }
  0x90   :  { %v933_v35 = vsub.f32 %v5527_v37, %v932_v62 }
  0x92   :  { %4603 = vmatpush3.bf16.msra.mxu0 %v5436_v63  ;;  %v934_v48 = vand.u32 4294901760, %v933_v35 }
  0x93   :  { %4604 = vmatprep.subr.bf16.mxu0 %v5207_v0 }
  0x94   :  { %v5714_v55 = vpack.c.bf16 %v934_v48, %v927_v47 }
  0x96   :  { %4606 = vmatpush3.bf16.msra.mxu0 %v6864_v34  ;;  %v968_v34 = vsub.f32 %v5547_v43, %v6825_v60 }
  0x97   :  { %4607 = vmatprep.subr.bf16.mxu0 %v5207_v0 }
  0x9a   :  { %4609 = vmatpush3.bf16.msra.mxu0 %v6865_v3  ;;  %v975_v3 = vsub.f32 %v5549_v51, %v6824_v7 }
  0x9b   :  { %4610 = vmatprep.subr.bf16.mxu0 %v5207_v0 }
  0x9e   :  { %4612 = vmatpush3.bf16.msra.mxu0 %v6866_v14  ;;  %v969_v14 = vand.u32 4294901760, %v968_v34 }
  0x9f   :  { %4613 = vmatprep.subr.bf16.mxu0 %v5207_v0 }
  0xa2   :  { %4615 = vmatpush3.bf16.msra.mxu0 %v5446_v4  ;;  %v798_v4 = vld [vmem:[%s6804_s3 + $0x50] sm:$0xff] }
  0xa3   :  { %4616 = vmatprep.subr.bf16.mxu0 %v5207_v0 }
  0xa5   :  { %3709 = vmatmul.mubr.f32.vlgmr.msra.gmra.mrb[0].mxu0 %v5309_v24 }
  0xa6   :  { %4618 = vmatpush3.bf16.msra.mxu0 %v5284_v12  ;;  %3711 = vmatprep.mubr.msk.f32.mxu0 %vm5208_vm0, %v6861_v17  ;;  %v799_v12 = vld [vmem:[%s6804_s3 + $0x58] sm:$0xff] }
  0xa7   :  { %4619 = vmatprep.subr.bf16.mxu0 %v5207_v0 }
  0xa9   :  { %3712 = vmatmul.mubr.f32.gmra.mrb[2].mxu0 %v5365_v54 }
  0xaa   :  { %4621 = vmatpush3.bf16.msra.mxu0 %v5287_v13  ;;  %3714 = vmatprep.mubr.msk.f32.mxu0 %vm5208_vm0, %v6861_v17  ;;  %v842_v13 = vand.u32 4294901760, %v798_v4 }
  0xab   :  { %4622 = vmatprep.subr.bf16.mxu0 %v5207_v0 }
  0xac   :  { %v5690_v15 = vsub.f32 %v798_v4, %v842_v13  ;;  %v976_v4 = vand.u32 4294901760, %v975_v3 }
  0xad   :  { %3715 = vmatmul.mubr.f32.gmra.mrb[4].mxu0 %v5387_v5 }
  0xae   :  { %4624 = vmatpush3.bf16.msra.mxu0 %v5297_v18  ;;  %3749 = vmatprep.mubr.msk.f32.mxu0 %vm5208_vm0, %v6861_v17  ;;  %v845_v18 = vand.u32 4294901760, %v799_v12 }
  0xaf   :  { %4625 = vmatprep.subr.bf16.mxu0 %v5207_v0 }
  0xb0   :  { %v5692_v26 = vsub.f32 %v799_v12, %v845_v18  ;;  %v6823_v12 = vand.u32 4294901760, %v5551_v56 }
  0xb2   :  { %4627 = vmatpush3.bf16.msra.mxu0 %v5312_v25  ;;  %v800_v25 = vld [vmem:[%s6804_s3 + $0x60] sm:$0xff] }
  0xb3   :  { %4628 = vmatprep.subr.bf16.mxu0 %v5207_v0 }
  0xb6   :  { %4630 = vmatpush3.bf16.msra.mxu0 %v5336_v36  ;;  %v801_v36 = vld [vmem:[%s6804_s3 + $0x68] sm:$0xff] }
  0xb7   :  { %4631 = vmatprep.subr.bf16.mxu0 %v5207_v0 }
  0xba   :  { %4633 = vmatpush3.bf16.msra.mxu0 %v5373_v57  ;;  %v851_v57 = vand.u32 4294901760, %v801_v36 }
  0xbb   :  { %4634 = vmatprep.subr.bf16.mxu0 %v5207_v0 }
  0xbc   :  { %v5708_v42 = vsub.f32 %v801_v36, %v851_v57 }
  0xbe   :  { %4636 = vmatpush3.bf16.msra.mxu0 %v5389_v6  ;;  %v802_v6 = vld [vmem:[%s6804_s3 + $0x70] sm:$0xff]  ;;  %v6818_v45 = vand.u32 4294901760, %v5708_v42 }
  0xbf   :  { %4637 = vmatprep.subr.bf16.mxu0 %v5207_v0  ;;  %v854_v52 = vand.u32 4294901760, %v802_v6 }
  0xc0   :  { %v1017_v8 = vsub.f32 %v5708_v42, %v6818_v45 }
  0xc1   :  { %v5722_v23 = vsub.f32 %v802_v6, %v854_v52  ;;  %v6821_v6 = vand.u32 4294901760, %v5690_v15 }
  0xc2   :  { %4639 = vmatpush3.bf16.msra.mxu0 %v5400_v11  ;;  %v803_v11 = vld [vmem:[%s6804_s3 + $0x78] sm:$0xff]  ;;  %v1018_v19 = vand.u32 4294901760, %v1017_v8 }
  0xc3   :  { %4784 = vmatprep.subr.bf16.mxu0 %v5207_v0  ;;  %v857_v58 = vand.u32 4294901760, %v803_v11  ;;  %v6817_v20 = vand.u32 4294901760, %v5722_v23 }
  0xc5   :  { %3750 = vmatmul.mubr.f32.vlgmr.msra.gmra.mrb[0].mxu0 %v5309_v24  ;;  %v5672_v24 = vpack.c.bf16 %v845_v18, %v842_v13  ;;  %v5698_v63 = vpack.c.bf16 %v857_v58, %v854_v52  ;;  %v5724_v30 = vsub.f32 %v803_v11, %v857_v58  ;;  %v6822_v13 = vand.u32 4294901760, %v5555_v44 }
  0xc6   :  { %3752 = vmatprep.mubr.msk.f32.mxu0 %vm5208_vm0, %v6861_v17  ;;  %v5748_v18 = vpack.c.bf16 %v976_v4, %v969_v14  ;;  %v6820_v11 = vand.u32 4294901760, %v5692_v26  ;;  %v996_v58 = vsub.f32 %v5690_v15, %v6821_v6  ;;  %v1024_v3 = vsub.f32 %v5722_v23, %v6817_v20 }
  0xc7   :  { %4657 = vmatpush3.bf16.msra.mxu1 %v5672_v24  ;;  %v989_v36 = vsub.f32 %v5555_v44, %v6822_v13  ;;  %v6816_v28 = vand.u32 4294901760, %v5724_v30  ;;  %v4710_v8 = vpack.c.bf16 %v5724_v30, %v5722_v23 }
  0xc8   :  { %4658 = vmatprep.subr.bf16.mxu1 %v5207_v0  ;;  %v1003_v32 = vsub.f32 %v5692_v26, %v6820_v11  ;;  %v997_v35 = vand.u32 4294901760, %v996_v58  ;;  %v1025_v4 = vand.u32 4294901760, %v1024_v3  ;;  %v4695_v58 = vpack.c.bf16 %v5544_v39, %v5540_v2 }
  0xc9   :  { %3753 = vmatmul.mubr.f32.gmra.mrb[2].mxu0 %v5365_v54  ;;  %v848_v54 = vand.u32 4294901760, %v800_v25  ;;  %v1031_v14 = vsub.f32 %v5724_v30, %v6816_v28 }
  0xca   :  { %3755 = vmatprep.mubr.msk.f32.mxu0 %vm5208_vm0, %v6861_v17  ;;  %v1004_v47 = vand.u32 4294901760, %v1003_v32  ;;  %v4698_v32 = vpack.c.bf16 %v5549_v51, %v5547_v43 }
  0xcb   :  { %v5706_v41 = vsub.f32 %v800_v25, %v848_v54  ;;  %v982_v25 = vsub.f32 %v5551_v56, %v6823_v12 }
  0xcc   :  { %v5768_v21 = vpack.c.bf16 %v1004_v47, %v997_v35  ;;  %v4701_v35 = vpack.c.bf16 %v5555_v44, %v5551_v56  ;;  %v4704_v47 = vpack.c.bf16 %v5692_v26, %v5690_v15 }
  0xcd   :  { %3756 = vmatmul.mubr.f32.gmra.mrb[4].mxu0 %v5387_v5  ;;  %v5682_v5 = vpack.c.bf16 %v851_v57, %v848_v54  ;;  %v983_v54 = vand.u32 4294901760, %v982_v25  ;;  %v990_v57 = vand.u32 4294901760, %v989_v36  ;;  %v6819_v48 = vand.u32 4294901760, %v5706_v41 }
  0xce   :  { %4036 = vmatprep.mubr.msk.f32.mxu0 %vm5208_vm0, %v6861_v17  ;;  %v1032_v25 = vand.u32 4294901760, %v1031_v14 }
  0xcf   :  { %4660 = vmatpush3.bf16.msra.mxu1 %v5682_v5  ;;  %v5758_v52 = vpack.c.bf16 %v990_v57, %v983_v54  ;;  %v1010_v31 = vsub.f32 %v5706_v41, %v6819_v48  ;;  %v4689_v54 = vpack.c.bf16 %v5527_v37, %v5525_v53  ;;  %v4692_v57 = vpack.c.bf16 %v5538_v38, %v5529_v1 }
  0xd0   :  { %4661 = vmatprep.subr.bf16.mxu1 %v5207_v0  ;;  %v4686_v36 = vpack.c.bf16 %v1032_v25, %v1025_v4  ;;  %v6870_v37 = vand.u32 4294901760, %v5540_v2  ;;  %v6875_v2 = vand.u32 4294901760, %v5551_v56  ;;  %v6881_v56 = vand.u32 4294901760, %v5722_v23 }
  0xd1   :  { %v1011_v16 = vand.u32 4294901760, %v1010_v31  ;;  %v4707_v31 = vpack.c.bf16 %v5708_v42, %v5706_v41 }
  0xd3   :  { %4663 = vmatpush3.bf16.msra.mxu1 %v5698_v63  ;;  %v4683_v34 = vpack.c.bf16 %v1018_v19, %v1011_v16  ;;  %v3052_v16 = vld [vmem:[%s6805_s2] ss:$0 sm:$0xff] }
  0xd4   :  { %4664 = vmatprep.subr.bf16.mxu1 %v5207_v0 }
 0x198   :  { %v769_v19 = vpop.f32.mrb[0].mxu0 }
 0x199   :  { %v5072_v3 = vadd.f32 %v3052_v16, %v769_v19  ;;  %v3751_v14 = vpop.f32.mrb[1].mxu0 }
 0x19b   :  { %v785_v4 = vmax.f32 %v5072_v3, 0.0 }
 0x19c   :  { %v775_v25 = vpop.f32.mrb[2].mxu0 }
 0x19d   :  { %v5803_v28 = vand.u32 4294901760, %v785_v4  ;;  %v5073_v20 = vadd.f32 %v3052_v16, %v775_v25  ;;  %v3754_v45 = vpop.f32.mrb[3].mxu0 }
 0x19f   :  { %v5806_v48 = vsub.f32 %v785_v4, %v5803_v28  ;;  %v786_v11 = vmax.f32 %v5073_v20, 0.0 }
 0x1a0   :  { %v781_v6 = vpop.f32.mrb[4].mxu0 }
 0x1a1   :  { %v5808_v13 = vand.u32 4294901760, %v786_v11  ;;  %v5074_v12 = vadd.f32 %v3052_v16, %v781_v6  ;;  %v3757_v7 = vpop.f32.mrb[5].mxu0  ;;  %v894_v60 = vand.u32 4294901760, %v5806_v48 }
 0x1a3   :  { %v5812_v19 = vsub.f32 %v786_v11, %v5808_v13  ;;  %v787_v3 = vmax.f32 %v5074_v12, 0.0  ;;  %v895_v14 = vsub.f32 %v5806_v48, %v894_v60 }
 0x1a5   :  { %v5817_v45 = vand.u32 4294901760, %v787_v3  ;;  %v896_v4 = vand.u32 4294901760, %v895_v14  ;;  %v6829_v20 = vand.u32 4294901760, %v5812_v19  ;;  %v1547_v14 = vld [vmem:[%s6806_s5 + $0x30] sm:$0xff]  ;;  %v6869_v53 = vand.u32 4294901760, %v5812_v19 }
 0x1a7   :  { %v5821_v25 = vsub.f32 %v787_v3, %v5817_v45  ;;  %3791 = vmatmul.mubr.f32.vlgmr.msra.gmra.mrb[0].mxu1 %v896_v4  ;;  %v905_v7 = vsub.f32 %v5812_v19, %v6829_v20  ;;  %v1548_v4 = vld [vmem:[%s6806_s5 + $0x38] sm:$0xff] }
 0x1a8   :  { %4666 = vmatpush3.bf16.msra.mxu1 %v5714_v55  ;;  %3793 = vmatprep.mubr.msk.f32.mxu1 %vm5208_vm0, %v6861_v17 }
 0x1a9   :  { %4667 = vmatprep.subr.bf16.mxu1 %v5207_v0  ;;  %v906_v12 = vand.u32 4294901760, %v905_v7  ;;  %v6826_v6 = vand.u32 4294901760, %v5821_v25  ;;  %v1549_v7 = vld [vmem:[%s6806_s5 + $0x40] sm:$0xff] }
 0x1ab   :  { %3794 = vmatmul.mubr.f32.gmra.mrb[2].mxu1 %v906_v12  ;;  %v915_v11 = vsub.f32 %v5821_v25, %v6826_v6 }
 0x1ac   :  { %4669 = vmatpush3.bf16.msra.mxu1 %v5728_v40  ;;  %3796 = vmatprep.mubr.msk.f32.mxu1 %vm5208_vm0, %v6861_v17  ;;  %v1541_v40 = vld [vmem:[%s6806_s5] sm:$0xff] }
 0x1ad   :  { %4670 = vmatprep.subr.bf16.mxu1 %v5207_v0  ;;  %v916_v55 = vand.u32 4294901760, %v915_v11 }
 0x1af   :  { %3797 = vmatmul.mubr.f32.gmra.mrb[4].mxu1 %v916_v55 }
 0x1b0   :  { %4672 = vmatpush3.bf16.msra.mxu1 %v5738_v10  ;;  %3831 = vmatprep.mubr.msk.f32.mxu1 %vm5208_vm0, %v6861_v17  ;;  %v1542_v10 = vld [vmem:[%s6806_s5 + $0x8] sm:$0xff] }
 0x1b1   :  { %4673 = vmatprep.subr.bf16.mxu1 %v5207_v0 }
 0x1b4   :  { %4675 = vmatpush3.bf16.msra.mxu1 %v5748_v18  ;;  %v1543_v18 = vld [vmem:[%s6806_s5 + $0x10] sm:$0xff] }
 0x1b5   :  { %4676 = vmatprep.subr.bf16.mxu1 %v5207_v0 }
 0x1b8   :  { %4678 = vmatpush3.bf16.msra.mxu1 %v5758_v52  ;;  %v1565_v52 = vand.u32 4294901760, %v1541_v40 }
 0x1b9   :  { %4679 = vmatprep.subr.bf16.mxu1 %v5207_v0 }
 0x1ba   :  { %v5894_v11 = vsub.f32 %v1541_v40, %v1565_v52 }
 0x1bc   :  { %4681 = vmatpush3.bf16.msra.mxu1 %v5768_v21  ;;  %v1568_v21 = vand.u32 4294901760, %v1542_v10 }
 0x1bd   :  { %4682 = vmatprep.subr.bf16.mxu1 %v5207_v0 }
 0x1be   :  { %v5892_v12 = vpack.c.bf16 %v1568_v21, %v1565_v52  ;;  %v5896_v55 = vsub.f32 %v1542_v10, %v1568_v21  ;;  %v1583_v10 = vand.u32 4294901760, %v1547_v14  ;;  %v1589_v52 = vand.u32 4294901760, %v1549_v7 }
 0x1bf   :  { %v1592_v21 = vand.u32 4294901760, %v1550_v9 }
 0x1c0   :  { %4684 = vmatpush3.bf16.msra.mxu1 %v4683_v34  ;;  %v1544_v34 = vld [vmem:[%s6806_s5 + $0x18] sm:$0xff]  ;;  %4786 = vmatpush3.bf16.msra.mxu0 %v5892_v12  ;;  %v5917_v22 = vsub.f32 %v1547_v14, %v1583_v10 }
 0x1c1   :  { %4685 = vmatprep.subr.bf16.mxu1 %v5207_v0  ;;  %4787 = vmatprep.subr.bf16.mxu0 %v5207_v0 }
 0x1c4   :  { %4687 = vmatpush3.bf16.msra.mxu1 %v4686_v36  ;;  %v1571_v36 = vand.u32 4294901760, %v1543_v18 }
 0x1c5   :  { %4688 = vmatprep.subr.bf16.mxu1 %v5207_v0 }
 0x1c6   :  { %v5898_v6 = vsub.f32 %v1543_v18, %v1571_v36  ;;  %v1586_v18 = vand.u32 4294901760, %v1548_v4 }
 0x1c7   :  { %3832 = vmatmul.mubr.f32.vlgmr.msra.gmra.mrb[0].mxu1 %v5803_v28 }
 0x1c8   :  { %4690 = vmatpush3.bf16.msra.mxu1 %v4689_v54  ;;  %3834 = vmatprep.mubr.msk.f32.mxu1 %vm5208_vm0, %v6861_v17  ;;  %v1545_v54 = vld [vmem:[%s6806_s5 + $0x20] sm:$0xff] }
 0x1c9   :  { %4691 = vmatprep.subr.bf16.mxu1 %v5207_v0  ;;  %v1577_v16 = vand.u32 4294901760, %v1545_v54 }
 0x1cb   :  { %3835 = vmatmul.mubr.f32.gmra.mrb[2].mxu1 %v5808_v13  ;;  %v5910_v27 = vsub.f32 %v1545_v54, %v1577_v16 }
 0x1cc   :  { %4693 = vmatpush3.bf16.msra.mxu1 %v4692_v57  ;;  %3837 = vmatprep.mubr.msk.f32.mxu1 %vm5208_vm0, %v6861_v17  ;;  %v1546_v57 = vld [vmem:[%s6806_s5 + $0x28] sm:$0xff] }
 0x1cd   :  { %4694 = vmatprep.subr.bf16.mxu1 %v5207_v0  ;;  %v1580_v3 = vand.u32 4294901760, %v1546_v57 }
 0x1cf   :  { %3838 = vmatmul.mubr.f32.gmra.mrb[4].mxu1 %v5817_v45  ;;  %v5914_v40 = vsub.f32 %v1546_v57, %v1580_v3  ;;  %v5930_v54 = vpack.c.bf16 %v1580_v3, %v1577_v16  ;;  %v5938_v57 = vpack.c.bf16 %v1586_v18, %v1583_v10  ;;  %v6880_v16 = vand.u32 4294901760, %v5708_v42  ;;  %v1556_v42 = vld [vmem:[%s6806_s5 + $0x78] sm:$0xff] }
 0x1d0   :  { %4696 = vmatpush3.bf16.msra.mxu1 %v4695_v58  ;;  %3872 = vmatprep.mubr.msk.f32.mxu1 %vm5208_vm0, %v6861_v17  ;;  %v1574_v58 = vand.u32 4294901760, %v1544_v34 }
 0x1d1   :  { %4697 = vmatprep.subr.bf16.mxu1 %v5207_v0 }
 0x1d2   :  { %v5906_v46 = vpack.c.bf16 %v1574_v58, %v1571_v36  ;;  %v5908_v20 = vsub.f32 %v1544_v34, %v1574_v58  ;;  %v5921_v34 = vsub.f32 %v1549_v7, %v1589_v52  ;;  %v5926_v36 = vsub.f32 %v1550_v9, %v1592_v21 }
 0x1d3   :  { %v5946_v9 = vpack.c.bf16 %v1592_v21, %v1589_v52  ;;  %v6879_v58 = vand.u32 4294901760, %v5706_v41  ;;  %v1555_v41 = vld [vmem:[%s6806_s5 + $0x70] sm:$0xff]  ;;  %v6847_v52 = vand.u32 4294901760, %v5898_v6 }
 0x1d4   :  { %4699 = vmatpush3.bf16.msra.mxu1 %v4698_v32  ;;  %v5919_v32 = vsub.f32 %v1548_v4, %v1586_v18  ;;  %4789 = vmatpush3.bf16.msra.mxu0 %v5906_v46  ;;  %v1607_v23 = vand.u32 4294901760, %v1555_v41  ;;  %v6846_v21 = vand.u32 4294901760, %v5908_v20 }
 0x1d5   :  { %4700 = vmatprep.subr.bf16.mxu1 %v5207_v0  ;;  %4790 = vmatprep.subr.bf16.mxu0 %v5207_v0  ;;  %v4755_v3 = vpack.c.bf16 %v6880_v16, %v6879_v58  ;;  %v6841_v58 = vand.u32 4294901760, %v5917_v22 }
 0x1d6   :  { %v6840_v16 = vand.u32 4294901760, %v5919_v32 }
 0x1d8   :  { %4702 = vmatpush3.bf16.msra.mxu1 %v4701_v35  ;;  %4792 = vmatpush3.bf16.msra.mxu0 %v5930_v54  ;;  %v4737_v35 = vpack.c.bf16 %v932_v62, %v925_v59  ;;  %v6871_v59 = vand.u32 4294901760, %v5544_v39  ;;  %v6876_v39 = vand.u32 4294901760, %v5555_v44  ;;  %v6882_v44 = vand.u32 4294901760, %v5724_v30 }
 0x1d9   :  { %4703 = vmatprep.subr.bf16.mxu1 %v5207_v0  ;;  %4793 = vmatprep.subr.bf16.mxu0 %v5207_v0  ;;  %v1610_v30 = vand.u32 4294901760, %v1556_v42 }
 0x1da   :  { %v4743_v62 = vpack.c.bf16 %v6871_v59, %v6870_v37  ;;  %v4758_v14 = vpack.c.bf16 %v6882_v44, %v6881_v56  ;;  %v1693_v37 = vsub.f32 %v5898_v6, %v6847_v52  ;;  %v1700_v59 = vsub.f32 %v5908_v20, %v6846_v21 }
 0x1db   :  { %v1721_v56 = vsub.f32 %v5917_v22, %v6841_v58  ;;  %v1728_v44 = vsub.f32 %v5919_v32, %v6840_v16 }
 0x1dc   :  { %4705 = vmatpush3.bf16.msra.mxu1 %v4704_v47  ;;  %4795 = vmatpush3.bf16.msra.mxu0 %v5938_v57  ;;  %v6867_v47 = vand.u32 4294901760, %v5529_v1  ;;  %v6872_v1 = vand.u32 4294901760, %v5821_v25 }
 0x1dd   :  { %4706 = vmatprep.subr.bf16.mxu1 %v5207_v0  ;;  %4796 = vmatprep.subr.bf16.mxu0 %v5207_v0 }
 0x1e0   :  { %4708 = vmatpush3.bf16.msra.mxu1 %v4707_v31  ;;  %4798 = vmatpush3.bf16.msra.mxu0 %v5946_v9  ;;  %v6868_v31 = vand.u32 4294901760, %v5538_v38  ;;  %v6873_v38 = vand.u32 4294901760, %v5547_v43  ;;  %v6878_v43 = vand.u32 4294901760, %v5692_v26 }
 0x1e1   :  { %4709 = vmatprep.subr.bf16.mxu1 %v5207_v0  ;;  %4799 = vmatprep.subr.bf16.mxu0 %v5207_v0 }
 0x1e4   :  { %4711 = vmatpush3.bf16.msra.mxu1 %v4710_v8  ;;  %v4740_v8 = vpack.c.bf16 %v6868_v31, %v6867_v47 }
 0x1e5   :  { %4712 = vmatprep.subr.bf16.mxu1 %v5207_v0 }
 0x1e7   :  { %3873 = vmatmul.mubr.f32.vlgmr.msra.gmra.mrb[0].mxu1 %v5806_v48 }
 0x1e8   :  { %4714 = vmatpush3.bf16.msra.mxu1 %v5523_v33  ;;  %3875 = vmatprep.mubr.msk.f32.mxu1 %vm5208_vm0, %v6861_v17 }
 0x1e9   :  { %4715 = vmatprep.subr.bf16.mxu1 %v5207_v0 }
 0x1eb   :  { %3876 = vmatmul.mubr.f32.gmra.mrb[2].mxu1 %v5812_v19  ;;  %v4749_v19 = vpack.c.bf16 %v6876_v39, %v6875_v2  ;;  %v6843_v2 = vand.u32 4294901760, %v5914_v40 }
 0x1ec   :  { %4717 = vmatpush3.bf16.msra.mxu1 %v5536_v50  ;;  %3878 = vmatprep.mubr.msk.f32.mxu1 %vm5208_vm0, %v6861_v17 }
 0x1ed   :  { %4718 = vmatprep.subr.bf16.mxu1 %v5207_v0 }
 0x1ef   :  { %3879 = vmatmul.mubr.f32.gmra.mrb[4].mxu1 %v5821_v25  ;;  %v6877_v25 = vand.u32 4294901760, %v5690_v15 }
 0x1f0   :  { %4720 = vmatpush3.bf16.msra.mxu1 %v5559_v49  ;;  %3913 = vmatprep.mubr.msk.f32.mxu1 %vm5208_vm0, %v6861_v17 }
 0x1f1   :  { %4721 = vmatprep.subr.bf16.mxu1 %v5207_v0 }
 0x1f4   :  { %4723 = vmatpush3.bf16.msra.mxu1 %v5566_v29 }
 0x1f5   :  { %4724 = vmatprep.subr.bf16.mxu1 %v5207_v0 }
 0x1f8   :  { %4726 = vmatpush3.bf16.msra.mxu1 %v5573_v61 }
 0x1f9   :  { %4727 = vmatprep.subr.bf16.mxu1 %v5207_v0 }
 0x1fc   :  { %4729 = vmatpush3.bf16.msra.mxu1 %v5672_v24 }
 0x1fd   :  { %4730 = vmatprep.subr.bf16.mxu1 %v5207_v0 }
 0x200   :  { %4732 = vmatpush3.bf16.msra.mxu1 %v5682_v5 }
 0x201   :  { %4733 = vmatprep.subr.bf16.mxu1 %v5207_v0 }
 0x204   :  { %4735 = vmatpush3.bf16.msra.mxu1 %v5698_v63 }
 0x205   :  { %4736 = vmatprep.subr.bf16.mxu1 %v5207_v0 }
 0x207   :  { %3914 = vmatmul.mubr.f32.vlgmr.msra.gmra.mrb[0].mxu1 %v894_v60  ;;  %v6874_v60 = vand.u32 4294901760, %v5549_v51  ;;  %v4752_v51 = vpack.c.bf16 %v6878_v43, %v6877_v25  ;;  %v1714_v25 = vsub.f32 %v5914_v40, %v6843_v2  ;;  %v2303_v2 = vld [vmem:[%s6808_s7 + $0x48] sm:$0xff] }
 0x208   :  { %4738 = vmatpush3.bf16.msra.mxu1 %v4737_v35  ;;  %3916 = vmatprep.mubr.msk.f32.mxu1 %vm5208_vm0, %v6861_v17 }
 0x209   :  { %4739 = vmatprep.subr.bf16.mxu1 %v5207_v0  ;;  %v4746_v48 = vpack.c.bf16 %v6874_v60, %v6873_v38  ;;  %v1694_v38 = vand.u32 4294901760, %v1693_v37  ;;  %v1701_v60 = vand.u32 4294901760, %v1700_v59 }
 0x20b   :  { %3917 = vmatmul.mubr.f32.gmra.mrb[2].mxu1 %v6869_v53  ;;  %v6128_v39 = vpack.c.bf16 %v1701_v60, %v1694_v38 }
 0x20c   :  { %4741 = vmatpush3.bf16.msra.mxu1 %v4740_v8  ;;  %3919 = vmatprep.mubr.msk.f32.mxu1 %vm5208_vm0, %v6861_v17 }
 0x20d   :  { %4742 = vmatprep.subr.bf16.mxu1 %v5207_v0 }
 0x20f   :  { %3920 = vmatmul.mubr.f32.gmra.mrb[4].mxu1 %v6872_v1  ;;  %v6124_v1 = vsub.f32 %v1556_v42, %v1610_v30 }
 0x210   :  { %4744 = vmatpush3.bf16.msra.mxu1 %v4743_v62  ;;  %3954 = vmatprep.mubr.msk.f32.mxu1 %vm5208_vm0, %v6861_v17  ;;  %v6122_v62 = vsub.f32 %v1555_v41, %v1607_v23 }
 0x211   :  { %4745 = vmatprep.subr.bf16.mxu1 %v5207_v0 }
 0x214   :  { %4747 = vmatpush3.bf16.msra.mxu1 %v4746_v48  ;;  %v6844_v48 = vand.u32 4294901760, %v5910_v27 }
 0x215   :  { %4748 = vmatprep.subr.bf16.mxu1 %v5207_v0 }
 0x218   :  { %4750 = vmatpush3.bf16.msra.mxu1 %v4749_v19  ;;  %v1707_v19 = vsub.f32 %v5910_v27, %v6844_v48 }
 0x219   :  { %4751 = vmatprep.subr.bf16.mxu1 %v5207_v0 }
 0x21a   :  { %v1708_v43 = vand.u32 4294901760, %v1707_v19 }
 0x21c   :  { %4753 = vmatpush3.bf16.msra.mxu1 %v4752_v51  ;;  %v1715_v51 = vand.u32 4294901760, %v1714_v25 }
 0x21d   :  { %4754 = vmatprep.subr.bf16.mxu1 %v5207_v0 }
 0x220   :  { %4756 = vmatpush3.bf16.msra.mxu1 %v4755_v3  ;;  %v6138_v3 = vpack.c.bf16 %v1715_v51, %v1708_v43  ;;  %v6833_v43 = vand.u32 4294901760, %v6122_v62  ;;  %v6832_v51 = vand.u32 4294901760, %v6124_v1 }
 0x221   :  { %4757 = vmatprep.subr.bf16.mxu1 %v5207_v0 }
 0x224   :  { %4759 = vmatpush3.bf16.msra.mxu1 %v4758_v14  ;;  %v1722_v14 = vand.u32 4294901760, %v1721_v56 }
 0x225   :  { %4760 = vmatprep.subr.bf16.mxu1 %v5207_v0 }
 0x227   :  { %3955 = vmatmul.mubr.f32.vlgmr.msra.gmra.mrb[0].mxu1 %v5803_v28 }
 0x228   :  { %4762 = vmatpush3.bf16.msra.mxu1 %v5523_v33  ;;  %3957 = vmatprep.mubr.msk.f32.mxu1 %vm5208_vm0, %v6861_v17  ;;  %v1551_v33 = vld [vmem:[%s6806_s5 + $0x50] sm:$0xff] }
 0x229   :  { %4763 = vmatprep.subr.bf16.mxu1 %v5207_v0 }
 0x22b   :  { %3958 = vmatmul.mubr.f32.gmra.mrb[2].mxu1 %v5808_v13 }
 0x22c   :  { %4765 = vmatpush3.bf16.msra.mxu1 %v5536_v50  ;;  %3960 = vmatprep.mubr.msk.f32.mxu1 %vm5208_vm0, %v6861_v17  ;;  %v1552_v50 = vld [vmem:[%s6806_s5 + $0x58] sm:$0xff] }
 0x22d   :  { %4766 = vmatprep.subr.bf16.mxu1 %v5207_v0 }
 0x22f   :  { %3961 = vmatmul.mubr.f32.gmra.mrb[4].mxu1 %v5817_v45 }
 0x230   :  { %4768 = vmatpush3.bf16.msra.mxu1 %v5559_v49  ;;  %3995 = vmatprep.mubr.msk.f32.mxu1 %vm5208_vm0, %v6861_v17  ;;  %v1595_v49 = vand.u32 4294901760, %v1551_v33 }
 0x231   :  { %4769 = vmatprep.subr.bf16.mxu1 %v5207_v0 }
 0x232   :  { %v6106_v35 = vsub.f32 %v1551_v33, %v1595_v49  ;;  %v1729_v33 = vand.u32 4294901760, %v1728_v44  ;;  %v1777_v44 = vsub.f32 %v6122_v62, %v6833_v43 }
 0x234   :  { %4771 = vmatpush3.bf16.msra.mxu1 %v5566_v29  ;;  %v1598_v29 = vand.u32 4294901760, %v1552_v50  ;;  %v6837_v41 = vand.u32 4294901760, %v6106_v35 }
 0x235   :  { %4772 = vmatprep.subr.bf16.mxu1 %v5207_v0 }
 0x236   :  { %v6108_v47 = vsub.f32 %v1552_v50, %v1598_v29  ;;  %v6839_v50 = vand.u32 4294901760, %v5921_v34 }
 0x238   :  { %4774 = vmatpush3.bf16.msra.mxu1 %v5573_v61  ;;  %v6072_v61 = vpack.c.bf16 %v1598_v29, %v1595_v49  ;;  %v6838_v49 = vand.u32 4294901760, %v5926_v36  ;;  %v6148_v29 = vpack.c.bf16 %v1729_v33, %v1722_v14  ;;  %v6836_v42 = vand.u32 4294901760, %v6108_v47 }
 0x239   :  { %4775 = vmatprep.subr.bf16.mxu1 %v5207_v0  ;;  %v1784_v14 = vsub.f32 %v6124_v1, %v6832_v51  ;;  %v1778_v33 = vand.u32 4294901760, %v1777_v44 }
 0x23a   :  { %4801 = vmatpush3.bf16.msra.mxu0 %v6072_v61 }
 0x23b   :  { %4802 = vmatprep.subr.bf16.mxu0 %v5207_v0 }
 0x23c   :  { %4777 = vmatpush3.bf16.msra.mxu1 %v5672_v24  ;;  %v1553_v24 = vld [vmem:[%s6806_s5 + $0x60] sm:$0xff] }
 0x23d   :  { %4778 = vmatprep.subr.bf16.mxu1 %v5207_v0  ;;  %v1601_v15 = vand.u32 4294901760, %v1553_v24 }
 0x23f   :  { %v6110_v31 = vsub.f32 %v1553_v24, %v1601_v15  ;;  %v1735_v24 = vsub.f32 %v5921_v34, %v6839_v50 }
 0x240   :  { %4780 = vmatpush3.bf16.msra.mxu1 %v5682_v5  ;;  %v1554_v5 = vld [vmem:[%s6806_s5 + $0x68] sm:$0xff] }
 0x241   :  { %4781 = vmatprep.subr.bf16.mxu1 %v5207_v0  ;;  %v1604_v26 = vand.u32 4294901760, %v1554_v5 }
 0x243   :  { %v6112_v8 = vsub.f32 %v1554_v5, %v1604_v26  ;;  %v1742_v5 = vsub.f32 %v5926_v36, %v6838_v49 }
 0x244   :  { %4783 = vmatpush3.bf16.msra.mxu1 %v5698_v63  ;;  %v6082_v63 = vpack.c.bf16 %v1604_v26, %v1601_v15  ;;  %v1736_v15 = vand.u32 4294901760, %v1735_v24  ;;  %v1785_v24 = vand.u32 4294901760, %v1784_v14 }
 0x245   :  { %4928 = vmatprep.subr.bf16.mxu1 %v5207_v0  ;;  %v1743_v26 = vand.u32 4294901760, %v1742_v5  ;;  %v6834_v37 = vand.u32 4294901760, %v6112_v8 }
 0x246   :  { %4804 = vmatpush3.bf16.msra.mxu0 %v6082_v63  ;;  %v4830_v5 = vpack.c.bf16 %v1785_v24, %v1778_v33 }
 0x247   :  { %3996 = vmatmul.mubr.f32.vlgmr.msra.gmra.mrb[0].mxu1 %v5803_v28  ;;  %v1685_v28 = vand.u32 4294901760, %v5896_v55  ;;  %4805 = vmatprep.subr.bf16.mxu0 %v5207_v0  ;;  %v1770_v60 = vsub.f32 %v6112_v8, %v6834_v37 }
 0x248   :  { %3998 = vmatprep.mubr.msk.f32.mxu1 %vm5208_vm0, %v6861_v17 }
 0x249   :  { %v1686_v7 = vsub.f32 %v5896_v55, %v1685_v28  ;;  %v1771_v25 = vand.u32 4294901760, %v1770_v60  ;;  %v4854_v60 = vpack.c.bf16 %v6124_v1, %v6122_v62 }
 0x24b   :  { %3999 = vmatmul.mubr.f32.gmra.mrb[2].mxu1 %v5808_v13  ;;  %v1678_v13 = vand.u32 4294901760, %v5894_v11  ;;  %v1687_v18 = vand.u32 4294901760, %v1686_v7 }
 0x24c   :  { %4001 = vmatprep.mubr.msk.f32.mxu1 %vm5208_vm0, %v6861_v17 }
 0x24d   :  { %v1679_v4 = vsub.f32 %v5894_v11, %v1678_v13 }
 0x24f   :  { %4002 = vmatmul.mubr.f32.gmra.mrb[4].mxu1 %v5817_v45  ;;  %v6094_v45 = vpack.c.bf16 %v1610_v30, %v1607_v23  ;;  %v1680_v10 = vand.u32 4294901760, %v1679_v4  ;;  %v6158_v23 = vpack.c.bf16 %v1743_v26, %v1736_v15  ;;  %v1749_v30 = vsub.f32 %v6106_v35, %v6837_v41 }
 0x250   :  { %4282 = vmatprep.mubr.msk.f32.mxu1 %vm5208_vm0, %v6861_v17  ;;  %v1756_v4 = vsub.f32 %v6108_v47, %v6836_v42  ;;  %v4833_v15 = vpack.c.bf16 %v5896_v55, %v5894_v11  ;;  %v4836_v26 = vpack.c.bf16 %v5908_v20, %v5898_v6  ;;  %v6886_v55 = vand.u32 4294901760, %v5910_v27 }
 0x251   :  { %4807 = vmatpush3.bf16.msra.mxu0 %v6094_v45  ;;  %v6114_v53 = vpack.c.bf16 %v1687_v18, %v1680_v10  ;;  %v1750_v7 = vand.u32 4294901760, %v1749_v30  ;;  %v6835_v18 = vand.u32 4294901760, %v6110_v31  ;;  %v4839_v30 = vpack.c.bf16 %v5914_v40, %v5910_v27 }
 0x252   :  { %4808 = vmatprep.subr.bf16.mxu0 %v5207_v0  ;;  %v1757_v10 = vand.u32 4294901760, %v1756_v4  ;;  %v4842_v4 = vpack.c.bf16 %v5919_v32, %v5917_v22  ;;  %v6891_v27 = vand.u32 4294901760, %v5921_v34 }
 0x253   :  { %v1763_v38 = vsub.f32 %v6110_v31, %v6835_v18 }
 0x254   :  { %v6168_v59 = vpack.c.bf16 %v1757_v10, %v1750_v7  ;;  %v4845_v7 = vpack.c.bf16 %v5926_v36, %v5921_v34  ;;  %v4848_v10 = vpack.c.bf16 %v6108_v47, %v6106_v35  ;;  %v6897_v34 = vand.u32 4294901760, %v6122_v62 }
 0x255   :  { %v1764_v19 = vand.u32 4294901760, %v1763_v38  ;;  %v4851_v38 = vpack.c.bf16 %v6112_v8, %v6110_v31 }
 0x257   :  { %v4827_v56 = vpack.c.bf16 %v1771_v25, %v1764_v19  ;;  %v3053_v19 = vld [vmem:[%s6807_s4] ss:$0 sm:$0xff] }
 0x31a   :  { %v1522_v25 = vpop.f32.mrb[0].mxu1 }
 0x31b   :  { %v5075_v44 = vadd.f32 %v3053_v19, %v1522_v25  ;;  %v3997_v14 = vpop.f32.mrb[1].mxu1 }
 0x31d   :  { %v1538_v33 = vmax.f32 %v5075_v44, 0.0 }
 0x31e   :  { %v1528_v24 = vpop.f32.mrb[2].mxu1 }
 0x31f   :  { %v6203_v51 = vand.u32 4294901760, %v1538_v33  ;;  %v5076_v43 = vadd.f32 %v3053_v19, %v1528_v24  ;;  %v4000_v37 = vpop.f32.mrb[3].mxu1 }
 0x321   :  { %v6206_v18 = vsub.f32 %v1538_v33, %v6203_v51  ;;  %v1539_v42 = vmax.f32 %v5076_v43, 0.0 }
 0x322   :  { %v1534_v41 = vpop.f32.mrb[4].mxu1 }
 0x323   :  { %v1647_v49 = vand.u32 4294901760, %v6206_v18  ;;  %v6209_v50 = vand.u32 4294901760, %v1539_v42  ;;  %v5077_v16 = vadd.f32 %v3053_v19, %v1534_v41  ;;  %v4003_v58 = vpop.f32.mrb[5].mxu1 }
 0x325   :  { %v1648_v25 = vsub.f32 %v6206_v18, %v1647_v49  ;;  %v6215_v44 = vsub.f32 %v1539_v42, %v6209_v50  ;;  %v1540_v14 = vmax.f32 %v5077_v16, 0.0 }
 0x327   :  { %v1649_v37 = vand.u32 4294901760, %v1648_v25  ;;  %v6217_v24 = vand.u32 4294901760, %v1540_v14  ;;  %v6845_v43 = vand.u32 4294901760, %v6215_v44  ;;  %v6885_v11 = vand.u32 4294901760, %v6215_v44 }
 0x329   :  { %v6221_v33 = vsub.f32 %v1540_v14, %v6217_v24  ;;  %4037 = vmatmul.mubr.f32.vlgmr.msra.gmra.mrb[6].mxu0 %v1649_v37  ;;  %v1658_v58 = vsub.f32 %v6215_v44, %v6845_v43  ;;  %v2300_v14 = vld [vmem:[%s6808_s7 + $0x30] sm:$0xff]  ;;  %v2301_v37 = vld [vmem:[%s6808_s7 + $0x38] sm:$0xff] }
 0x32a   :  { %4810 = vmatpush3.bf16.msra.mxu0 %v6114_v53  ;;  %4039 = vmatprep.mubr.msk.f32.mxu0 %vm5208_vm0, %v6861_v17 }
 0x32b   :  { %4811 = vmatprep.subr.bf16.mxu0 %v5207_v0  ;;  %v1659_v16 = vand.u32 4294901760, %v1658_v58  ;;  %v6842_v41 = vand.u32 4294901760, %v6221_v33  ;;  %v2302_v58 = vld [vmem:[%s6808_s7 + $0x40] sm:$0xff] }
 0x32d   :  { %4040 = vmatmul.mubr.f32.gmra.mrb[8].mxu0 %v1659_v16  ;;  %v1668_v42 = vsub.f32 %v6221_v33, %v6842_v41 }
 0x32e   :  { %4813 = vmatpush3.bf16.msra.mxu0 %v6128_v39  ;;  %4042 = vmatprep.mubr.msk.f32.mxu0 %vm5208_vm0, %v6861_v17  ;;  %v2294_v39 = vld [vmem:[%s6808_s7] sm:$0xff] }
 0x32f   :  { %4814 = vmatprep.subr.bf16.mxu0 %v5207_v0  ;;  %v1669_v53 = vand.u32 4294901760, %v1668_v42 }
 0x331   :  { %4043 = vmatmul.mubr.f32.gmra.mrb[10].mxu0 %v1669_v53 }
 0x332   :  { %4816 = vmatpush3.bf16.msra.mxu0 %v6138_v3  ;;  %4077 = vmatprep.mubr.msk.f32.mxu0 %vm5208_vm0, %v6861_v17  ;;  %v2295_v3 = vld [vmem:[%s6808_s7 + $0x8] sm:$0xff] }
 0x333   :  { %4817 = vmatprep.subr.bf16.mxu0 %v5207_v0 }
 0x336   :  { %4819 = vmatpush3.bf16.msra.mxu0 %v6148_v29  ;;  %v2296_v29 = vld [vmem:[%s6808_s7 + $0x10] sm:$0xff] }
 0x337   :  { %4820 = vmatprep.subr.bf16.mxu0 %v5207_v0 }
 0x33a   :  { %4822 = vmatpush3.bf16.msra.mxu0 %v6158_v23  ;;  %v2318_v23 = vand.u32 4294901760, %v2294_v39 }
 0x33b   :  { %4823 = vmatprep.subr.bf16.mxu0 %v5207_v0 }
 0x33c   :  { %v6294_v42 = vsub.f32 %v2294_v39, %v2318_v23 }
 0x33e   :  { %4825 = vmatpush3.bf16.msra.mxu0 %v6168_v59  ;;  %v2321_v59 = vand.u32 4294901760, %v2295_v3 }
 0x33f   :  { %4826 = vmatprep.subr.bf16.mxu0 %v5207_v0 }
 0x340   :  { %v6292_v16 = vpack.c.bf16 %v2321_v59, %v2318_v23  ;;  %v6296_v53 = vsub.f32 %v2295_v3, %v2321_v59  ;;  %v2336_v3 = vand.u32 4294901760, %v2300_v14  ;;  %v2342_v23 = vand.u32 4294901760, %v2302_v58 }
 0x341   :  { %v2345_v59 = vand.u32 4294901760, %v2303_v2 }
 0x342   :  { %4828 = vmatpush3.bf16.msra.mxu0 %v4827_v56  ;;  %v2297_v56 = vld [vmem:[%s6808_s7 + $0x18] sm:$0xff]  ;;  %4930 = vmatpush3.bf16.msra.mxu1 %v6292_v16  ;;  %v6317_v52 = vsub.f32 %v2300_v14, %v2336_v3 }
 0x343   :  { %4829 = vmatprep.subr.bf16.mxu0 %v5207_v0  ;;  %4931 = vmatprep.subr.bf16.mxu1 %v5207_v0 }
 0x346   :  { %4831 = vmatpush3.bf16.msra.mxu0 %v4830_v5  ;;  %v2324_v5 = vand.u32 4294901760, %v2296_v29 }
 0x347   :  { %4832 = vmatprep.subr.bf16.mxu0 %v5207_v0 }
 0x348   :  { %v6298_v41 = vsub.f32 %v2296_v29, %v2324_v5  ;;  %v2339_v29 = vand.u32 4294901760, %v2301_v37 }
 0x349   :  { %4078 = vmatmul.mubr.f32.vlgmr.msra.gmra.mrb[6].mxu0 %v6203_v51 }
 0x34a   :  { %4834 = vmatpush3.bf16.msra.mxu0 %v4833_v15  ;;  %4080 = vmatprep.mubr.msk.f32.mxu0 %vm5208_vm0, %v6861_v17  ;;  %v2298_v15 = vld [vmem:[%s6808_s7 + $0x20] sm:$0xff] }
 0x34b   :  { %4835 = vmatprep.subr.bf16.mxu0 %v5207_v0  ;;  %v2330_v19 = vand.u32 4294901760, %v2298_v15 }
 0x34d   :  { %4081 = vmatmul.mubr.f32.gmra.mrb[8].mxu0 %v6209_v50  ;;  %v6310_v21 = vsub.f32 %v2298_v15, %v2330_v19 }
 0x34e   :  { %4837 = vmatpush3.bf16.msra.mxu0 %v4836_v26  ;;  %4083 = vmatprep.mubr.msk.f32.mxu0 %vm5208_vm0, %v6861_v17  ;;  %v2299_v26 = vld [vmem:[%s6808_s7 + $0x28] sm:$0xff] }
 0x34f   :  { %4838 = vmatprep.subr.bf16.mxu0 %v5207_v0  ;;  %v2333_v25 = vand.u32 4294901760, %v2299_v26 }
 0x351   :  { %4084 = vmatmul.mubr.f32.gmra.mrb[10].mxu0 %v6217_v24  ;;  %v6314_v39 = vsub.f32 %v2299_v26, %v2333_v25  ;;  %v6330_v15 = vpack.c.bf16 %v2333_v25, %v2330_v19  ;;  %v6338_v26 = vpack.c.bf16 %v2339_v29, %v2336_v3  ;;  %v6896_v19 = vand.u32 4294901760, %v6112_v8  ;;  %v2309_v8 = vld [vmem:[%s6808_s7 + $0x78] sm:$0xff] }
 0x352   :  { %4840 = vmatpush3.bf16.msra.mxu0 %v4839_v30  ;;  %4118 = vmatprep.mubr.msk.f32.mxu0 %vm5208_vm0, %v6861_v17  ;;  %v2327_v30 = vand.u32 4294901760, %v2297_v56 }
 0x353   :  { %4841 = vmatprep.subr.bf16.mxu0 %v5207_v0 }
 0x354   :  { %v6306_v48 = vpack.c.bf16 %v2327_v30, %v2324_v5  ;;  %v6308_v43 = vsub.f32 %v2297_v56, %v2327_v30  ;;  %v6321_v56 = vsub.f32 %v2302_v58, %v2342_v23  ;;  %v6326_v5 = vsub.f32 %v2303_v2, %v2345_v59 }
 0x355   :  { %v6346_v2 = vpack.c.bf16 %v2345_v59, %v2342_v23  ;;  %v6895_v30 = vand.u32 4294901760, %v6110_v31  ;;  %v2308_v31 = vld [vmem:[%s6808_s7 + $0x70] sm:$0xff]  ;;  %v2445_v23 = vand.u32 4294901760, %v6298_v41 }
 0x356   :  { %4843 = vmatpush3.bf16.msra.mxu0 %v4842_v4  ;;  %v6319_v4 = vsub.f32 %v2301_v37, %v2339_v29  ;;  %4933 = vmatpush3.bf16.msra.mxu1 %v6306_v48  ;;  %v2360_v62 = vand.u32 4294901760, %v2308_v31  ;;  %v2452_v59 = vand.u32 4294901760, %v6308_v43 }
 0x357   :  { %4844 = vmatprep.subr.bf16.mxu0 %v5207_v0  ;;  %4934 = vmatprep.subr.bf16.mxu1 %v5207_v0  ;;  %v4899_v25 = vpack.c.bf16 %v6896_v19, %v6895_v30  ;;  %v6857_v30 = vand.u32 4294901760, %v6317_v52 }
 0x358   :  { %v6856_v19 = vand.u32 4294901760, %v6319_v4 }
 0x35a   :  { %4846 = vmatpush3.bf16.msra.mxu0 %v4845_v7  ;;  %4936 = vmatpush3.bf16.msra.mxu1 %v6330_v15  ;;  %v4881_v7 = vpack.c.bf16 %v1685_v28, %v1678_v13  ;;  %v6887_v13 = vand.u32 4294901760, %v5914_v40  ;;  %v6892_v40 = vand.u32 4294901760, %v5926_v36  ;;  %v6898_v36 = vand.u32 4294901760, %v6124_v1 }
 0x35b   :  { %4847 = vmatprep.subr.bf16.mxu0 %v5207_v0  ;;  %4937 = vmatprep.subr.bf16.mxu1 %v5207_v0  ;;  %v2363_v1 = vand.u32 4294901760, %v2309_v8 }
 0x35c   :  { %v4887_v28 = vpack.c.bf16 %v6887_v13, %v6886_v55  ;;  %v4902_v14 = vpack.c.bf16 %v6898_v36, %v6897_v34  ;;  %v2446_v55 = vsub.f32 %v6298_v41, %v2445_v23  ;;  %v2453_v13 = vsub.f32 %v6308_v43, %v2452_v59 }
 0x35d   :  { %v2474_v34 = vsub.f32 %v6317_v52, %v6857_v30  ;;  %v2481_v36 = vsub.f32 %v6319_v4, %v6856_v19 }
 0x35e   :  { %4849 = vmatpush3.bf16.msra.mxu0 %v4848_v10  ;;  %4939 = vmatpush3.bf16.msra.mxu1 %v6338_v26  ;;  %v6883_v10 = vand.u32 4294901760, %v5898_v6  ;;  %v6888_v6 = vand.u32 4294901760, %v6221_v33 }
 0x35f   :  { %4850 = vmatprep.subr.bf16.mxu0 %v5207_v0  ;;  %4940 = vmatprep.subr.bf16.mxu1 %v5207_v0 }
 0x362   :  { %4852 = vmatpush3.bf16.msra.mxu0 %v4851_v38  ;;  %4942 = vmatpush3.bf16.msra.mxu1 %v6346_v2  ;;  %v6884_v38 = vand.u32 4294901760, %v5908_v20  ;;  %v6889_v20 = vand.u32 4294901760, %v5917_v22  ;;  %v6894_v22 = vand.u32 4294901760, %v6108_v47 }
 0x363   :  { %4853 = vmatprep.subr.bf16.mxu0 %v5207_v0  ;;  %4943 = vmatprep.subr.bf16.mxu1 %v5207_v0 }
 0x366   :  { %4855 = vmatpush3.bf16.msra.mxu0 %v4854_v60  ;;  %v4884_v60 = vpack.c.bf16 %v6884_v38, %v6883_v10 }
 0x367   :  { %4856 = vmatprep.subr.bf16.mxu0 %v5207_v0 }
 0x369   :  { %4119 = vmatmul.mubr.f32.vlgmr.msra.gmra.mrb[6].mxu0 %v6206_v18 }
 0x36a   :  { %4858 = vmatpush3.bf16.msra.mxu0 %v5892_v12  ;;  %4121 = vmatprep.mubr.msk.f32.mxu0 %vm5208_vm0, %v6861_v17 }
 0x36b   :  { %4859 = vmatprep.subr.bf16.mxu0 %v5207_v0 }
 0x36d   :  { %4122 = vmatmul.mubr.f32.gmra.mrb[8].mxu0 %v6215_v44  ;;  %v4893_v44 = vpack.c.bf16 %v6892_v40, %v6891_v27  ;;  %v2466_v27 = vand.u32 4294901760, %v6314_v39 }
 0x36e   :  { %4861 = vmatpush3.bf16.msra.mxu0 %v5906_v46  ;;  %4124 = vmatprep.mubr.msk.f32.mxu0 %vm5208_vm0, %v6861_v17 }
 0x36f   :  { %4862 = vmatprep.subr.bf16.mxu0 %v5207_v0 }
 0x371   :  { %4125 = vmatmul.mubr.f32.gmra.mrb[10].mxu0 %v6221_v33  ;;  %v6893_v33 = vand.u32 4294901760, %v6106_v35 }
 0x372   :  { %4864 = vmatpush3.bf16.msra.mxu0 %v5930_v54  ;;  %4159 = vmatprep.mubr.msk.f32.mxu0 %vm5208_vm0, %v6861_v17 }
 0x373   :  { %4865 = vmatprep.subr.bf16.mxu0 %v5207_v0 }
 0x376   :  { %4867 = vmatpush3.bf16.msra.mxu0 %v5938_v57 }
 0x377   :  { %4868 = vmatprep.subr.bf16.mxu0 %v5207_v0 }
 0x37a   :  { %4870 = vmatpush3.bf16.msra.mxu0 %v5946_v9 }
 0x37b   :  { %4871 = vmatprep.subr.bf16.mxu0 %v5207_v0 }
 0x37e   :  { %4873 = vmatpush3.bf16.msra.mxu0 %v6072_v61 }
 0x37f   :  { %4874 = vmatprep.subr.bf16.mxu0 %v5207_v0 }
 0x382   :  { %4876 = vmatpush3.bf16.msra.mxu0 %v6082_v63 }
 0x383   :  { %4877 = vmatprep.subr.bf16.mxu0 %v5207_v0 }
 0x386   :  { %4879 = vmatpush3.bf16.msra.mxu0 %v6094_v45 }
 0x387   :  { %4880 = vmatprep.subr.bf16.mxu0 %v5207_v0 }
 0x389   :  { %4160 = vmatmul.mubr.f32.vlgmr.msra.gmra.mrb[6].mxu0 %v1647_v49  ;;  %v6890_v49 = vand.u32 4294901760, %v5919_v32  ;;  %v4896_v32 = vpack.c.bf16 %v6894_v22, %v6893_v33  ;;  %v2467_v33 = vsub.f32 %v6314_v39, %v2466_v27 }
 0x38a   :  { %4882 = vmatpush3.bf16.msra.mxu0 %v4881_v7  ;;  %4162 = vmatprep.mubr.msk.f32.mxu0 %vm5208_vm0, %v6861_v17 }
 0x38b   :  { %4883 = vmatprep.subr.bf16.mxu0 %v5207_v0  ;;  %v4890_v18 = vpack.c.bf16 %v6890_v49, %v6889_v20  ;;  %v2447_v20 = vand.u32 4294901760, %v2446_v55  ;;  %v2454_v49 = vand.u32 4294901760, %v2453_v13 }
 0x38d   :  { %4163 = vmatmul.mubr.f32.gmra.mrb[8].mxu0 %v6885_v11  ;;  %v6525_v40 = vpack.c.bf16 %v2454_v49, %v2447_v20 }
 0x38e   :  { %4885 = vmatpush3.bf16.msra.mxu0 %v4884_v60  ;;  %4165 = vmatprep.mubr.msk.f32.mxu0 %vm5208_vm0, %v6861_v17 }
 0x38f   :  { %4886 = vmatprep.subr.bf16.mxu0 %v5207_v0 }
 0x391   :  { %4166 = vmatmul.mubr.f32.gmra.mrb[10].mxu0 %v6888_v6  ;;  %v6521_v6 = vsub.f32 %v2309_v8, %v2363_v1 }
 0x392   :  { %4888 = vmatpush3.bf16.msra.mxu0 %v4887_v28  ;;  %4200 = vmatprep.mubr.msk.f32.mxu0 %vm5208_vm0, %v6861_v17  ;;  %v6519_v28 = vsub.f32 %v2308_v31, %v2360_v62 }
 0x393   :  { %4889 = vmatprep.subr.bf16.mxu0 %v5207_v0 }
 0x396   :  { %4891 = vmatpush3.bf16.msra.mxu0 %v4890_v18  ;;  %v2459_v18 = vand.u32 4294901760, %v6310_v21 }
 0x397   :  { %4892 = vmatprep.subr.bf16.mxu0 %v5207_v0 }
 0x39a   :  { %4894 = vmatpush3.bf16.msra.mxu0 %v4893_v44  ;;  %v2460_v44 = vsub.f32 %v6310_v21, %v2459_v18 }
 0x39b   :  { %4895 = vmatprep.subr.bf16.mxu0 %v5207_v0 }
 0x39c   :  { %v2461_v22 = vand.u32 4294901760, %v2460_v44 }
 0x39e   :  { %4897 = vmatpush3.bf16.msra.mxu0 %v4896_v32  ;;  %v2468_v32 = vand.u32 4294901760, %v2467_v33 }
 0x39f   :  { %4898 = vmatprep.subr.bf16.mxu0 %v5207_v0 }
 0x3a2   :  { %4900 = vmatpush3.bf16.msra.mxu0 %v4899_v25  ;;  %v6535_v25 = vpack.c.bf16 %v2468_v32, %v2461_v22  ;;  %v6849_v22 = vand.u32 4294901760, %v6519_v28  ;;  %v6848_v32 = vand.u32 4294901760, %v6521_v6 }
 0x3a3   :  { %4901 = vmatprep.subr.bf16.mxu0 %v5207_v0 }
 0x3a6   :  { %4903 = vmatpush3.bf16.msra.mxu0 %v4902_v14  ;;  %v2475_v14 = vand.u32 4294901760, %v2474_v34 }
 0x3a7   :  { %4904 = vmatprep.subr.bf16.mxu0 %v5207_v0 }
 0x3a9   :  { %4201 = vmatmul.mubr.f32.vlgmr.msra.gmra.mrb[6].mxu0 %v6203_v51 }
 0x3aa   :  { %4906 = vmatpush3.bf16.msra.mxu0 %v5892_v12  ;;  %4203 = vmatprep.mubr.msk.f32.mxu0 %vm5208_vm0, %v6861_v17  ;;  %v2305_v12 = vld [vmem:[%s6808_s7 + $0x58] sm:$0xff] }
 0x3ab   :  { %4907 = vmatprep.subr.bf16.mxu0 %v5207_v0 }
 0x3ad   :  { %4204 = vmatmul.mubr.f32.gmra.mrb[8].mxu0 %v6209_v50 }
 0x3ae   :  { %4909 = vmatpush3.bf16.msra.mxu0 %v5906_v46  ;;  %4206 = vmatprep.mubr.msk.f32.mxu0 %vm5208_vm0, %v6861_v17  ;;  %v2304_v46 = vld [vmem:[%s6808_s7 + $0x50] sm:$0xff] }
 0x3af   :  { %4910 = vmatprep.subr.bf16.mxu0 %v5207_v0 }
 0x3b1   :  { %4207 = vmatmul.mubr.f32.gmra.mrb[10].mxu0 %v6217_v24 }
 0x3b2   :  { %4912 = vmatpush3.bf16.msra.mxu0 %v5930_v54  ;;  %4241 = vmatprep.mubr.msk.f32.mxu0 %vm5208_vm0, %v6861_v17  ;;  %v2348_v54 = vand.u32 4294901760, %v2304_v46 }
 0x3b3   :  { %4913 = vmatprep.subr.bf16.mxu0 %v5207_v0 }
 0x3b4   :  { %v6503_v7 = vsub.f32 %v2304_v46, %v2348_v54  ;;  %v2482_v46 = vand.u32 4294901760, %v2481_v36  ;;  %v2530_v36 = vsub.f32 %v6519_v28, %v6849_v22 }
 0x3b6   :  { %4915 = vmatpush3.bf16.msra.mxu0 %v5938_v57  ;;  %v2351_v57 = vand.u32 4294901760, %v2305_v12  ;;  %v6853_v31 = vand.u32 4294901760, %v6503_v7 }
 0x3b7   :  { %4916 = vmatprep.subr.bf16.mxu0 %v5207_v0 }
 0x3b8   :  { %v6505_v10 = vsub.f32 %v2305_v12, %v2351_v57  ;;  %v6855_v12 = vand.u32 4294901760, %v6321_v56 }
 0x3ba   :  { %4918 = vmatpush3.bf16.msra.mxu0 %v5946_v9  ;;  %v6469_v9 = vpack.c.bf16 %v2351_v57, %v2348_v54  ;;  %v6854_v54 = vand.u32 4294901760, %v6326_v5  ;;  %v6545_v57 = vpack.c.bf16 %v2482_v46, %v2475_v14  ;;  %v6852_v8 = vand.u32 4294901760, %v6505_v10 }
 0x3bb   :  { %4919 = vmatprep.subr.bf16.mxu0 %v5207_v0  ;;  %v2537_v14 = vsub.f32 %v6521_v6, %v6848_v32  ;;  %v2531_v46 = vand.u32 4294901760, %v2530_v36 }
 0x3bc   :  { %4945 = vmatpush3.bf16.msra.mxu1 %v6469_v9 }
 0x3bd   :  { %4946 = vmatprep.subr.bf16.mxu1 %v5207_v0 }
 0x3be   :  { %4921 = vmatpush3.bf16.msra.mxu0 %v6072_v61  ;;  %v2306_v61 = vld [vmem:[%s6808_s7 + $0x60] sm:$0xff] }
 0x3bf   :  { %4922 = vmatprep.subr.bf16.mxu0 %v5207_v0 }
 0x3c2   :  { %4924 = vmatpush3.bf16.msra.mxu0 %v6082_v63  ;;  %v2307_v63 = vld [vmem:[%s6808_s7 + $0x68] sm:$0xff] }
 0x3c3   :  { %4925 = vmatprep.subr.bf16.mxu0 %v5207_v0  ;;  %v2357_v35 = vand.u32 4294901760, %v2307_v63 }
 0x3c5   :  { %v6509_v60 = vsub.f32 %v2307_v63, %v2357_v35  ;;  %v2495_v63 = vsub.f32 %v6326_v5, %v6854_v54 }
 0x3c6   :  { %4927 = vmatpush3.bf16.msra.mxu0 %v6094_v45  ;;  %v2354_v45 = vand.u32 4294901760, %v2306_v61 }
 0x3c7   :  { %v6850_v55 = vand.u32 4294901760, %v6509_v60 }
 0x3c8   :  { %v6479_v47 = vpack.c.bf16 %v2357_v35, %v2354_v45  ;;  %v6507_v38 = vsub.f32 %v2306_v61, %v2354_v45  ;;  %v2488_v61 = vsub.f32 %v6321_v56, %v6855_v12  ;;  %v2496_v35 = vand.u32 4294901760, %v2495_v63 }
 0x3c9   :  { %4242 = vmatmul.mubr.f32.vlgmr.msra.gmra.mrb[6].mxu0 %v6203_v51  ;;  %v2438_v51 = vand.u32 4294901760, %v6296_v53  ;;  %v2523_v49 = vsub.f32 %v6509_v60, %v6850_v55 }
 0x3ca   :  { %4244 = vmatprep.mubr.msk.f32.mxu0 %vm5208_vm0, %v6861_v17  ;;  %4948 = vmatpush3.bf16.msra.mxu1 %v6479_v47  ;;  %v2489_v45 = vand.u32 4294901760, %v2488_v61  ;;  %v2538_v61 = vand.u32 4294901760, %v2537_v14 }
 0x3cb   :  { %4949 = vmatprep.subr.bf16.mxu1 %v5207_v0  ;;  %v2439_v58 = vsub.f32 %v6296_v53, %v2438_v51  ;;  %v2524_v33 = vand.u32 4294901760, %v2523_v49  ;;  %v4998_v49 = vpack.c.bf16 %v6521_v6, %v6519_v28 }
 0x3cc   :  { %v4974_v63 = vpack.c.bf16 %v2538_v61, %v2531_v46 }
 0x3cd   :  { %4245 = vmatmul.mubr.f32.gmra.mrb[8].mxu0 %v6209_v50  ;;  %v2431_v50 = vand.u32 4294901760, %v6294_v42  ;;  %v2440_v29 = vand.u32 4294901760, %v2439_v58 }
 0x3ce   :  { %4247 = vmatprep.mubr.msk.f32.mxu0 %vm5208_vm0, %v6861_v17 }
 0x3cf   :  { %v2432_v37 = vsub.f32 %v6294_v42, %v2431_v50 }
 0x3d1   :  { %4248 = vmatmul.mubr.f32.gmra.mrb[10].mxu0 %v6217_v24  ;;  %v6491_v24 = vpack.c.bf16 %v2363_v1, %v2360_v62  ;;  %v2433_v3 = vand.u32 4294901760, %v2432_v37  ;;  %v6555_v62 = vpack.c.bf16 %v2496_v35, %v2489_v45  ;;  %v2502_v1 = vsub.f32 %v6503_v7, %v6853_v31 }
 0x3d2   :  { %v2509_v37 = vsub.f32 %v6505_v10, %v6852_v8  ;;  %v4977_v45 = vpack.c.bf16 %v6296_v53, %v6294_v42  ;;  %v4980_v35 = vpack.c.bf16 %v6308_v43, %v6298_v41  ;;  %v5031_v42 = vpack.c.bf16 %v2466_v27, %v2459_v18 }
 0x3d3   :  { %4951 = vmatpush3.bf16.msra.mxu1 %v6491_v24  ;;  %v6511_v11 = vpack.c.bf16 %v2440_v29, %v2433_v3  ;;  %v2503_v58 = vand.u32 4294901760, %v2502_v1  ;;  %v6851_v29 = vand.u32 4294901760, %v6507_v38  ;;  %v4983_v1 = vpack.c.bf16 %v6314_v39, %v6310_v21 }
 0x3d4   :  { %4952 = vmatprep.subr.bf16.mxu1 %v5207_v0  ;;  %v2510_v3 = vand.u32 4294901760, %v2509_v37  ;;  %v4986_v37 = vpack.c.bf16 %v6319_v4, %v6317_v52  ;;  %v6899_v43 = vand.u32 4294901760, %v6317_v52  ;;  %v6900_v41 = vand.u32 4294901760, %v6319_v4 }
 0x3d5   :  { %v2516_v20 = vsub.f32 %v6507_v38, %v6851_v29  ;;  %v6901_v21 = vand.u32 4294901760, %v6321_v56  ;;  %v6902_v39 = vand.u32 4294901760, %v6326_v5  ;;  %v6904_v52 = vand.u32 4294901760, %v6505_v10 }
 0x3d6   :  { %v6565_v13 = vpack.c.bf16 %v2510_v3, %v2503_v58  ;;  %v4989_v58 = vpack.c.bf16 %v6326_v5, %v6321_v56  ;;  %v4992_v3 = vpack.c.bf16 %v6505_v10, %v6503_v7  ;;  %v5034_v53 = vpack.c.bf16 %v6900_v41, %v6899_v43 }
 0x3d7   :  { %v2517_v44 = vand.u32 4294901760, %v2516_v20  ;;  %v4995_v20 = vpack.c.bf16 %v6509_v60, %v6507_v38  ;;  %v6907_v56 = vand.u32 4294901760, %v6519_v28  ;;  %v6908_v5 = vand.u32 4294901760, %v6521_v6 }
 0x3d9   :  { %v4971_v34 = vpack.c.bf16 %v2524_v33, %v2517_v44  ;;  %v3054_v44 = vld [vmem:[%s6809_s6] ss:$0 sm:$0xff]  ;;  %v5046_v27 = vpack.c.bf16 %v6908_v5, %v6907_v56 }
 0x49c   :  { %v2275_v33 = vpop.f32.mrb[6].mxu0 }
 0x49d   :  { %v5078_v36 = vadd.f32 %v3054_v44, %v2275_v33  ;;  %v4243_v14 = vpop.f32.mrb[7].mxu0 }
 0x49f   :  { %v2291_v46 = vmax.f32 %v5078_v36, 0.0 }
 0x4a0   :  { %v2281_v61 = vpop.f32.mrb[8].mxu0 }
 0x4a1   :  { %v6600_v32 = vand.u32 4294901760, %v2291_v46  ;;  %v5079_v22 = vadd.f32 %v3054_v44, %v2281_v61  ;;  %v4246_v55 = vpop.f32.mrb[9].mxu0 }
 0x4a3   :  { %v6603_v29 = vsub.f32 %v2291_v46, %v6600_v32  ;;  %v2292_v8 = vmax.f32 %v5079_v22, 0.0 }
 0x4a4   :  { %v2287_v31 = vpop.f32.mrb[10].mxu0 }
 0x4a5   :  { %v2400_v54 = vand.u32 4294901760, %v6603_v29  ;;  %v6606_v12 = vand.u32 4294901760, %v2292_v8  ;;  %v5080_v19 = vadd.f32 %v3054_v44, %v2287_v31  ;;  %v4249_v30 = vpop.f32.mrb[11].mxu0 }
 0x4a7   :  { %v2401_v33 = vsub.f32 %v6603_v29, %v2400_v54  ;;  %v6612_v36 = vsub.f32 %v2292_v8, %v6606_v12  ;;  %v2293_v14 = vmax.f32 %v5080_v19, 0.0 }
 0x4a9   :  { %v2402_v55 = vand.u32 4294901760, %v2401_v33  ;;  %v6614_v61 = vand.u32 4294901760, %v2293_v14  ;;  %v2410_v22 = vand.u32 4294901760, %v6612_v36 }
 0x4ab   :  { %v6618_v46 = vsub.f32 %v2293_v14, %v6614_v61  ;;  %4283 = vmatmul.mubr.f32.vlgmr.msra.gmra.mrb[6].mxu1 %v2402_v55  ;;  %v2411_v30 = vsub.f32 %v6612_v36, %v2410_v22 }
 0x4ac   :  { %4954 = vmatpush3.bf16.msra.mxu1 %v6511_v11  ;;  %4285 = vmatprep.mubr.msk.f32.mxu1 %vm5208_vm0, %v6861_v17 }
 0x4ad   :  { %4955 = vmatprep.subr.bf16.mxu1 %v5207_v0  ;;  %v2412_v19 = vand.u32 4294901760, %v2411_v30  ;;  %v2420_v31 = vand.u32 4294901760, %v6618_v46 }
 0x4af   :  { %4286 = vmatmul.mubr.f32.gmra.mrb[8].mxu1 %v2412_v19  ;;  %v2421_v8 = vsub.f32 %v6618_v46, %v2420_v31 }
 0x4b0   :  { %4957 = vmatpush3.bf16.msra.mxu1 %v6525_v40  ;;  %4288 = vmatprep.mubr.msk.f32.mxu1 %vm5208_vm0, %v6861_v17  ;;  %v5025_v40 = vpack.c.bf16 %v2438_v51, %v2431_v50  ;;  %v5037_v50 = vpack.c.bf16 %v6902_v39, %v6901_v21  ;;  %v6903_v51 = vand.u32 4294901760, %v6503_v7 }
 0x4b1   :  { %4958 = vmatprep.subr.bf16.mxu1 %v5207_v0  ;;  %v2422_v11 = vand.u32 4294901760, %v2421_v8 }
 0x4b2   :  { %v5040_v4 = vpack.c.bf16 %v6904_v52, %v6903_v51 }
 0x4b3   :  { %4289 = vmatmul.mubr.f32.gmra.mrb[10].mxu1 %v2422_v11 }
 0x4b4   :  { %4960 = vmatpush3.bf16.msra.mxu1 %v6535_v25  ;;  %4323 = vmatprep.mubr.msk.f32.mxu1 %vm5208_vm0, %v6861_v17  ;;  %v5028_v25 = vpack.c.bf16 %v2452_v59, %v2445_v23  ;;  %v6905_v23 = vand.u32 4294901760, %v6507_v38  ;;  %v6906_v59 = vand.u32 4294901760, %v6509_v60 }
 0x4b5   :  { %4961 = vmatprep.subr.bf16.mxu1 %v5207_v0 }
 0x4b6   :  { %v5043_v18 = vpack.c.bf16 %v6906_v59, %v6905_v23 }
 0x4b8   :  { %4963 = vmatpush3.bf16.msra.mxu1 %v6545_v57 }
 0x4b9   :  { %4964 = vmatprep.subr.bf16.mxu1 %v5207_v0 }
 0x4bc   :  { %4966 = vmatpush3.bf16.msra.mxu1 %v6555_v62 }
 0x4bd   :  { %4967 = vmatprep.subr.bf16.mxu1 %v5207_v0 }
 0x4c0   :  { %4969 = vmatpush3.bf16.msra.mxu1 %v6565_v13 }
 0x4c1   :  { %4970 = vmatprep.subr.bf16.mxu1 %v5207_v0 }
 0x4c4   :  { %4972 = vmatpush3.bf16.msra.mxu1 %v4971_v34 }
 0x4c5   :  { %4973 = vmatprep.subr.bf16.mxu1 %v5207_v0 }
 0x4c8   :  { %4975 = vmatpush3.bf16.msra.mxu1 %v4974_v63 }
 0x4c9   :  { %4976 = vmatprep.subr.bf16.mxu1 %v5207_v0 }
 0x4cb   :  { %4324 = vmatmul.mubr.f32.vlgmr.msra.gmra.mrb[6].mxu1 %v6600_v32 }
 0x4cc   :  { %4978 = vmatpush3.bf16.msra.mxu1 %v4977_v45  ;;  %4326 = vmatprep.mubr.msk.f32.mxu1 %vm5208_vm0, %v6861_v17 }
 0x4cd   :  { %4979 = vmatprep.subr.bf16.mxu1 %v5207_v0 }
 0x4cf   :  { %4327 = vmatmul.mubr.f32.gmra.mrb[8].mxu1 %v6606_v12 }
 0x4d0   :  { %4981 = vmatpush3.bf16.msra.mxu1 %v4980_v35  ;;  %4329 = vmatprep.mubr.msk.f32.mxu1 %vm5208_vm0, %v6861_v17 }
 0x4d1   :  { %4982 = vmatprep.subr.bf16.mxu1 %v5207_v0 }
 0x4d3   :  { %4330 = vmatmul.mubr.f32.gmra.mrb[10].mxu1 %v6614_v61 }
 0x4d4   :  { %4984 = vmatpush3.bf16.msra.mxu1 %v4983_v1  ;;  %4364 = vmatprep.mubr.msk.f32.mxu1 %vm5208_vm0, %v6861_v17 }
 0x4d5   :  { %4985 = vmatprep.subr.bf16.mxu1 %v5207_v0 }
 0x4d8   :  { %4987 = vmatpush3.bf16.msra.mxu1 %v4986_v37 }
 0x4d9   :  { %4988 = vmatprep.subr.bf16.mxu1 %v5207_v0 }
 0x4dc   :  { %4990 = vmatpush3.bf16.msra.mxu1 %v4989_v58 }
 0x4dd   :  { %4991 = vmatprep.subr.bf16.mxu1 %v5207_v0 }
 0x4e0   :  { %4993 = vmatpush3.bf16.msra.mxu1 %v4992_v3 }
 0x4e1   :  { %4994 = vmatprep.subr.bf16.mxu1 %v5207_v0 }
 0x4e4   :  { %4996 = vmatpush3.bf16.msra.mxu1 %v4995_v20 }
 0x4e5   :  { %4997 = vmatprep.subr.bf16.mxu1 %v5207_v0 }
 0x4e8   :  { %4999 = vmatpush3.bf16.msra.mxu1 %v4998_v49 }
 0x4e9   :  { %5000 = vmatprep.subr.bf16.mxu1 %v5207_v0 }
 0x4eb   :  { %4365 = vmatmul.mubr.f32.vlgmr.msra.gmra.mrb[6].mxu1 %v6603_v29 }
 0x4ec   :  { %5002 = vmatpush3.bf16.msra.mxu1 %v6292_v16  ;;  %4367 = vmatprep.mubr.msk.f32.mxu1 %vm5208_vm0, %v6861_v17 }
 0x4ed   :  { %5003 = vmatprep.subr.bf16.mxu1 %v5207_v0 }
 0x4ef   :  { %4368 = vmatmul.mubr.f32.gmra.mrb[8].mxu1 %v6612_v36 }
 0x4f0   :  { %5005 = vmatpush3.bf16.msra.mxu1 %v6306_v48  ;;  %4370 = vmatprep.mubr.msk.f32.mxu1 %vm5208_vm0, %v6861_v17 }
 0x4f1   :  { %5006 = vmatprep.subr.bf16.mxu1 %v5207_v0 }
 0x4f3   :  { %4371 = vmatmul.mubr.f32.gmra.mrb[10].mxu1 %v6618_v46 }
 0x4f4   :  { %5008 = vmatpush3.bf16.msra.mxu1 %v6330_v15  ;;  %4405 = vmatprep.mubr.msk.f32.mxu1 %vm5208_vm0, %v6861_v17 }
 0x4f5   :  { %5009 = vmatprep.subr.bf16.mxu1 %v5207_v0 }
 0x4f8   :  { %5011 = vmatpush3.bf16.msra.mxu1 %v6338_v26 }
 0x4f9   :  { %5012 = vmatprep.subr.bf16.mxu1 %v5207_v0 }
 0x4fc   :  { %5014 = vmatpush3.bf16.msra.mxu1 %v6346_v2 }
 0x4fd   :  { %5015 = vmatprep.subr.bf16.mxu1 %v5207_v0 }
 0x500   :  { %5017 = vmatpush3.bf16.msra.mxu1 %v6469_v9 }
 0x501   :  { %5018 = vmatprep.subr.bf16.mxu1 %v5207_v0 }
 0x504   :  { %5020 = vmatpush3.bf16.msra.mxu1 %v6479_v47 }
 0x505   :  { %5021 = vmatprep.subr.bf16.mxu1 %v5207_v0 }
 0x508   :  { %5023 = vmatpush3.bf16.msra.mxu1 %v6491_v24 }
 0x509   :  { %5024 = vmatprep.subr.bf16.mxu1 %v5207_v0 }
 0x50b   :  { %4406 = vmatmul.mubr.f32.vlgmr.msra.gmra.mrb[6].mxu1 %v2400_v54 }
 0x50c   :  { %5026 = vmatpush3.bf16.msra.mxu1 %v5025_v40  ;;  %4408 = vmatprep.mubr.msk.f32.mxu1 %vm5208_vm0, %v6861_v17 }
 0x50d   :  { %5027 = vmatprep.subr.bf16.mxu1 %v5207_v0 }
 0x50f   :  { %4409 = vmatmul.mubr.f32.gmra.mrb[8].mxu1 %v2410_v22 }
 0x510   :  { %5029 = vmatpush3.bf16.msra.mxu1 %v5028_v25  ;;  %4411 = vmatprep.mubr.msk.f32.mxu1 %vm5208_vm0, %v6861_v17 }
 0x511   :  { %5030 = vmatprep.subr.bf16.mxu1 %v5207_v0 }
 0x513   :  { %4412 = vmatmul.mubr.f32.gmra.mrb[10].mxu1 %v2420_v31 }
 0x514   :  { %5032 = vmatpush3.bf16.msra.mxu1 %v5031_v42  ;;  %4446 = vmatprep.mubr.msk.f32.mxu1 %vm5208_vm0, %v6861_v17 }
 0x515   :  { %5033 = vmatprep.subr.bf16.mxu1 %v5207_v0 }
 0x518   :  { %5035 = vmatpush3.bf16.msra.mxu1 %v5034_v53 }
 0x519   :  { %5036 = vmatprep.subr.bf16.mxu1 %v5207_v0 }
 0x51c   :  { %5038 = vmatpush3.bf16.msra.mxu1 %v5037_v50 }
 0x51d   :  { %5039 = vmatprep.subr.bf16.mxu1 %v5207_v0 }
 0x520   :  { %5041 = vmatpush3.bf16.msra.mxu1 %v5040_v4 }
 0x521   :  { %5042 = vmatprep.subr.bf16.mxu1 %v5207_v0 }
 0x524   :  { %5044 = vmatpush3.bf16.msra.mxu1 %v5043_v18 }
 0x525   :  { %5045 = vmatprep.subr.bf16.mxu1 %v5207_v0 }
 0x528   :  { %5047 = vmatpush3.bf16.msra.mxu1 %v5046_v27 }
 0x529   :  { %5048 = vmatprep.subr.bf16.mxu1 %v5207_v0 }
 0x52b   :  { %4447 = vmatmul.mubr.f32.vlgmr.msra.gmra.mrb[6].mxu1 %v6600_v32 }
 0x52c   :  { %5050 = vmatpush3.bf16.msra.mxu1 %v6292_v16  ;;  %4449 = vmatprep.mubr.msk.f32.mxu1 %vm5208_vm0, %v6861_v17 }
 0x52d   :  { %5051 = vmatprep.subr.bf16.mxu1 %v5207_v0 }
 0x52f   :  { %4450 = vmatmul.mubr.f32.gmra.mrb[8].mxu1 %v6606_v12 }
 0x530   :  { %5053 = vmatpush3.bf16.msra.mxu1 %v6306_v48  ;;  %4452 = vmatprep.mubr.msk.f32.mxu1 %vm5208_vm0, %v6861_v17  ;;  %v3055_v48 = vld [vmem:[%s6810_s8] ss:$0 sm:$0xff] }
 0x531   :  { %5054 = vmatprep.subr.bf16.mxu1 %v5207_v0 }
 0x533   :  { %4453 = vmatmul.mubr.f32.gmra.mrb[10].mxu1 %v6614_v61 }
 0x534   :  { %5056 = vmatpush3.bf16.msra.mxu1 %v6330_v15  ;;  %4487 = vmatprep.mubr.msk.f32.mxu1 %vm5208_vm0, %v6861_v17 }
 0x535   :  { %5057 = vmatprep.subr.bf16.mxu1 %v5207_v0 }
 0x538   :  { %5059 = vmatpush3.bf16.msra.mxu1 %v6338_v26 }
 0x539   :  { %5060 = vmatprep.subr.bf16.mxu1 %v5207_v0 }
 0x53c   :  { %5062 = vmatpush3.bf16.msra.mxu1 %v6346_v2 }
 0x53d   :  { %5063 = vmatprep.subr.bf16.mxu1 %v5207_v0 }
 0x540   :  { %5065 = vmatpush3.bf16.msra.mxu1 %v6469_v9 }
 0x541   :  { %5066 = vmatprep.subr.bf16.mxu1 %v5207_v0 }
 0x544   :  { %5068 = vmatpush3.bf16.msra.mxu1 %v6479_v47 }
 0x545   :  { %5069 = vmatprep.subr.bf16.mxu1 %v5207_v0 }
 0x548   :  { %5071 = vmatpush3.bf16.msra.mxu1 %v6491_v24 }
 0x54b   :  { %4488 = vmatmul.mubr.f32.vlgmr.msra.gmra.mrb[6].mxu1 %v6600_v32 }
 0x54c   :  { %4490 = vmatprep.mubr.msk.f32.mxu1 %vm5208_vm0, %v6861_v17 }
 0x54f   :  { %4491 = vmatmul.mubr.f32.gmra.mrb[8].mxu1 %v6606_v12 }
 0x550   :  { %4493 = vmatprep.mubr.msk.f32.mxu1 %vm5208_vm0, %v6861_v17 }
 0x553   :  { %4494 = vmatmul.mubr.f32.gmra.mrb[10].mxu1 %v6614_v61 }
 0x61e   :  { %v3028_v16 = vpop.f32.mrb[6].mxu1 }
 0x61f   :  { %v5081_v0 = vadd.f32 %v3055_v48, %v3028_v16  ;;  %v4489_v15 = vpop.f32.mrb[7].mxu1 }
 0x621   :  { %3045 = vst.msk [vmem:[%s6811_s9] sm:$0xff] %vm3044_vm1, %v5081_v0 }
 0x622   :  { %v3034_v26 = vpop.f32.mrb[8].mxu1 }
 0x623   :  { %v5082_v2 = vadd.f32 %v3055_v48, %v3034_v26  ;;  %v4492_v9 = vpop.f32.mrb[9].mxu1 }
 0x625   :  { %3046 = vst.msk [vmem:[%s6811_s9 + $0x8] sm:$0xff] %vm3044_vm1, %v5082_v2 }
 0x626   :  { %v3040_v17 = vpop.f32.mrb[10].mxu1 }
 0x627   :  { %v5083_v47 = vadd.f32 %v3055_v48, %v3040_v17  ;;  %v4495_v24 = vpop.f32.mrb[11].mxu1 }
 0x629   :  { %3047 = vst.msk [vmem:[%s6811_s9 + $0x10] sm:$0xff] %vm3044_vm1, %v5083_v47 }

</bundles_post_ra>
